<compile_context>
chip_gen: v7x
topology: tpu7x:2x2x1
jax: 0.10.0
libtpu: 0.0.40
codegen_flags: <defaults>
</compile_context>

<pallas_src>
import functools
import math

import jax
import jax.numpy as jnp
from jax.experimental import pallas as pl
from jax.experimental.pallas import tpu as pltpu


def discriminator_kernel(x_ref, wproj_ref, bproj_ref, wfused_ref,
                         w1_ref, b1_ref, wlin_ref, blin_ref,
                         out_ref, *, hidden, seq_len, batch):
    H, T, B = hidden, seq_len, batch

    # ---- Hoisted input projection for ALL time steps (one MXU matmul).
    # Column layout is [i0,i1,f0,f1,g0,g1,o0,o1]; layer-1 columns of wproj are
    # zero and b_proj carries b1 there, so this slab already contains every
    # non-recurrent term of the fused per-step gates.
    # TODO(synk): for long sequences on v7x (64 MiB VMEM) chunk this projection
    # over T (grid axis / emit_pipeline) instead of keeping the full slab live.
    xw = jnp.dot(x_ref[...], wproj_ref[...],
                 preferred_element_type=jnp.float32) + bproj_ref[...]   # [T*B, 8H] f32

    wfused = wfused_ref[...]        # [2H, 8H] bf16
    b1 = b1_ref[...]                # [1, 4H]  f32

    def fused_cell(gates, c_cat):
        # Single tanh over the whole gate slab: sigmoid(x) = 0.5*tanh(x/2)+0.5,
        # with the 0.5 pre-scale already folded into the i/f/o weight columns.
        y = jnp.tanh(gates)
        i = 0.5 * y[:, 0:2 * H] + 0.5
        f = 0.5 * y[:, 2 * H:4 * H] + 0.5
        g = y[:, 4 * H:6 * H]
        o = 0.5 * y[:, 6 * H:8 * H] + 0.5
        c_new = f * c_cat + i * g                 # [B, 2H] = [c0 | c1]
        h_new = o * jnp.tanh(c_new)               # [B, 2H] = [h0 | h1]
        return h_new, c_new

    # ---- Prologue: layer-0 at t=0 (zero initial state). The layer-1 half of
    # this fused step is fictitious (it would apply b1 to a zero state), so it
    # is masked back to zero to stay correct for arbitrary (non-zero) biases.
    mask_l0 = jnp.concatenate([jnp.ones((1, H), jnp.float32),
                               jnp.zeros((1, H), jnp.float32)], axis=-1)
    h_cat, c_cat = fused_cell(xw[0:B, :], jnp.zeros((B, 2 * H), jnp.float32))
    c_cat = c_cat * mask_l0
    h_bf = (h_cat * mask_l0).astype(jnp.bfloat16)

    # ---- Pipelined recurrence: step s computes layer-0 gates for step s and
    # layer-1 gates for step s-1 with ONE matmul.  1 matmul + 2 tanh per step.
    # TODO(synk): nn.LSTM(dropout=0.1) applies only in training mode between
    # layers; eval-mode semantics (no dropout) implemented here.
    for s in range(1, T):
        gates = xw[s * B:(s + 1) * B, :] + jnp.dot(
            h_bf, wfused, preferred_element_type=jnp.float32)
        h_cat, c_cat = fused_cell(gates, c_cat)
        h_bf = h_cat.astype(jnp.bfloat16)

    # ---- Epilogue: layer-1 at t = T-1 (standard [i,f,g,o] layout, pre-scaled).
    g1 = jnp.dot(h_bf, w1_ref[...], preferred_element_type=jnp.float32) + b1
    y = jnp.tanh(g1)
    i = 0.5 * y[:, 0:H] + 0.5
    f = 0.5 * y[:, H:2 * H] + 0.5
    g = y[:, 2 * H:3 * H]
    o = 0.5 * y[:, 3 * H:4 * H] + 0.5
    c1 = f * c_cat[:, H:2 * H] + i * g
    h1 = o * jnp.tanh(c1)

    # ---- Head: N=1 matmul is degenerate -> VPU multiply + lane reduction.
    logit = jnp.sum(h1 * wlin_ref[...], axis=-1, keepdims=True) + blin_ref[...]
    out_ref[...] = 0.5 * (jnp.tanh(0.5 * logit) + 1.0)


def _xavier_uniform(key, shape):
    # shape = (fan_out, fan_in), matches torch.nn.init.xavier_uniform_ on 2-D weights
    fan_out, fan_in = shape
    bound = math.sqrt(6.0 / (fan_in + fan_out))
    return jax.random.uniform(key, shape, jnp.float32, -bound, bound)


def init_discriminator_params(key, input_dim, hidden_units, add_batch_mean=False):
    in_dim = 2 * input_dim if add_batch_mean else input_dim
    H = hidden_units + (hidden_units if add_batch_mean else 0)
    k = jax.random.split(key, 5)
    params = {
        # LSTM layer 0
        "w_ih0": _xavier_uniform(k[0], (4 * H, in_dim)),
        "w_hh0": _xavier_uniform(k[1], (4 * H, H)),
        "b0": jnp.zeros((4 * H,), jnp.float32),   # b_ih + b_hh (both zero-init)
        # LSTM layer 1
        "w_ih1": _xavier_uniform(k[2], (4 * H, H)),
        "w_hh1": _xavier_uniform(k[3], (4 * H, H)),
        "b1": jnp.zeros((4 * H,), jnp.float32),
        # Linear head
        "w_lin": _xavier_uniform(k[4], (1, H)),
        "b_lin": jnp.zeros((1,), jnp.float32),
    }
    return params, H


def _interleave_gates(a, b, H):
    """a, b: [R, 4H] in PyTorch [i,f,g,o] gate order ->
    [R, 8H] in [i_a,i_b,f_a,f_b,g_a,g_b,o_a,o_b] order."""
    R = a.shape[0]
    a4 = a.reshape(R, 4, H)
    b4 = b.reshape(R, 4, H)
    return jnp.stack([a4, b4], axis=2).reshape(R, 8 * H)


def discriminator_forward(x, params, hidden, add_batch_mean=False):
    """x: [B, T, D] float32 (batch_first, like the PyTorch module)."""
    if add_batch_mean:
        bm = jnp.mean(x, axis=0, keepdims=True)
        x = jnp.concatenate([x, jnp.broadcast_to(bm, x.shape)], axis=-1)

    B, T, D = x.shape
    H = hidden

    # Pad batch to a multiple of 16 (bf16 sublane tile) so per-step bf16 packs
    # of the carried hidden state are full-tile.  Batch-mean (above) uses the
    # real batch; padded rows are sliced off at the end.
    B_pad = max(16, ((B + 15) // 16) * 16)
    if B_pad != B:
        x = jnp.pad(x, ((0, B_pad - B), (0, 0), (0, 0)))

    # Time-major, flattened to [T*B_pad, D]: layer-0 projection is one matmul.
    x_flat = jnp.transpose(x, (1, 0, 2)).reshape(T * B_pad, D)

    # ---- Pre-stacked / pre-scaled weights (sigmoid-via-tanh: i/f/o scaled 0.5).
    scale4 = jnp.concatenate([jnp.full((H,), 0.5, jnp.float32),
                              jnp.full((H,), 0.5, jnp.float32),
                              jnp.ones((H,), jnp.float32),
                              jnp.full((H,), 0.5, jnp.float32)])
    scale8 = jnp.concatenate([jnp.full((2 * H,), 0.5, jnp.float32),
                              jnp.full((2 * H,), 0.5, jnp.float32),
                              jnp.ones((2 * H,), jnp.float32),
                              jnp.full((2 * H,), 0.5, jnp.float32)])

    wih0_T = params["w_ih0"].T            # [D, 4H]
    whh0_T = params["w_hh0"].T            # [H, 4H]
    wih1_T = params["w_ih1"].T            # [H, 4H]
    whh1_T = params["w_hh1"].T            # [H, 4H]

    # One-shot projection: layer-0 input weights in layer-0 columns, zeros in
    # layer-1 columns; both layers' biases folded into b_proj.
    w_proj = _interleave_gates(wih0_T, jnp.zeros_like(wih0_T), H) * scale8      # [D, 8H]
    b_proj = _interleave_gates(params["b0"].reshape(1, -1),
                               params["b1"].reshape(1, -1), H) * scale8          # [1, 8H]
    # Fused recurrent weight: [[Whh0^T, Wih1^T], [0, Whh1^T]] -> [2H, 8H]
    w_fused = jnp.concatenate(
        [_interleave_gates(whh0_T, wih1_T, H),
         _interleave_gates(jnp.zeros_like(whh1_T), whh1_T, H)], axis=0) * scale8
    # Epilogue weight for layer-1 at the last step: [Wih1^T ; Whh1^T] -> [2H, 4H]
    w1_epi = jnp.concatenate([wih1_T, whh1_T], axis=0) * scale4
    b1_epi = params["b1"].reshape(1, -1) * scale4

    # Matmul operands bf16; biases / head stay f32.
    args = (
        x_flat.astype(jnp.bfloat16),
        w_proj.astype(jnp.bfloat16),
        b_proj.astype(jnp.float32),
        w_fused.astype(jnp.bfloat16),
        w1_epi.astype(jnp.bfloat16),
        b1_epi.astype(jnp.float32),
        params["w_lin"].astype(jnp.float32),                 # [1, H]
        params["b_lin"].reshape(1, 1).astype(jnp.float32),
    )

    vmem = pl.BlockSpec(memory_space=pltpu.MemorySpace.VMEM)

    # Gridless: the recurrence is strictly serial at these shapes.  For v7x at
    # production batch sizes, add a batch grid axis with
    # dimension_semantics=("parallel",) to use both TensorCores.
    out = pl.pallas_call(
        functools.partial(discriminator_kernel, hidden=H, seq_len=T, batch=B_pad),
        out_shape=jax.ShapeDtypeStruct((B_pad, 1), jnp.float32),
        in_specs=[vmem] * len(args),
        out_specs=vmem,
    )(*args)
    return out[:B]


def _reference_forward(x, params, hidden, add_batch_mean=False):
    """Pure-JAX (f32) reference for correctness checking."""
    if add_batch_mean:
        bm = jnp.mean(x, axis=0, keepdims=True)
        x = jnp.concatenate([x, jnp.broadcast_to(bm, x.shape)], axis=-1)
    B, T, _ = x.shape
    H = hidden

    def cell(x_t, h, c, w_ih, w_hh, b):
        gates = x_t @ w_ih.T + h @ w_hh.T + b
        i = jax.nn.sigmoid(gates[:, 0:H])
        f = jax.nn.sigmoid(gates[:, H:2 * H])
        g = jnp.tanh(gates[:, 2 * H:3 * H])
        o = jax.nn.sigmoid(gates[:, 3 * H:4 * H])
        c = f * c + i * g
        h = o * jnp.tanh(c)
        return h, c

    h0 = c0 = h1 = c1 = jnp.zeros((B, H), jnp.float32)
    for t in range(T):
        h0, c0 = cell(x[:, t, :], h0, c0, params["w_ih0"], params["w_hh0"], params["b0"])
        h1, c1 = cell(h0, h1, c1, params["w_ih1"], params["w_hh1"], params["b1"])
    logit = h1 @ params["w_lin"].T + params["b_lin"]
    return jax.nn.sigmoid(logit)


if __name__ == "__main__":
    key = jax.random.PRNGKey(0)
    k_param, k_x = jax.random.split(key)

    # Small shapes consistent with the module: batch=4, seq=8, input_dim=16, hidden=32
    B, T, input_dim, hidden_units = 4, 8, 16, 32
    add_batch_mean = False

    params, H = init_discriminator_params(k_param, input_dim, hidden_units, add_batch_mean)
    x = jax.random.normal(k_x, (B, T, input_dim), jnp.float32)

    out = discriminator_forward(x, params, hidden=H, add_batch_mean=add_batch_mean)
    out = jax.block_until_ready(out)

    assert out.shape == (B, 1)
    assert bool(jnp.all((out >= 0.0) & (out <= 1.0)))

    ref = _reference_forward(x, params, hidden=H, add_batch_mean=add_batch_mean)
    assert bool(jnp.allclose(out, ref, atol=5e-2)), (out, ref)

    print("KERNEL_OK")
</pallas_src>

<mosaic_0001>
module attributes {stable_mosaic.version = 11 : i64} {
  func.func @discriminator_kernel(%arg0: memref<128x16xbf16, #tpu.memory_space<vmem>>, %arg1: memref<16x256xbf16, #tpu.memory_space<vmem>>, %arg2: memref<1x256xf32, #tpu.memory_space<vmem>>, %arg3: memref<64x256xbf16, #tpu.memory_space<vmem>>, %arg4: memref<64x128xbf16, #tpu.memory_space<vmem>>, %arg5: memref<1x128xf32, #tpu.memory_space<vmem>>, %arg6: memref<1x32xf32, #tpu.memory_space<vmem>>, %arg7: memref<1x1xf32, #tpu.memory_space<vmem>>, %arg8: memref<16x1xf32, #tpu.memory_space<vmem>>) attributes {dimension_semantics = [], scalar_prefetch = 0 : i64, scratch_operands = 0 : i64, tpu.core_type = #tpu.core_type<tc>} {
    %c0 = arith.constant 0 : index
    %c0_0 = arith.constant 0 : index
    %0 = vector.load %arg0[%c0, %c0_0] : memref<128x16xbf16, #tpu.memory_space<vmem>>, vector<128x16xbf16>
    %c0_1 = arith.constant 0 : index
    %c0_2 = arith.constant 0 : index
    %1 = vector.load %arg1[%c0_1, %c0_2] : memref<16x256xbf16, #tpu.memory_space<vmem>>, vector<16x256xbf16>
    %cst = arith.constant dense<0.000000e+00> : vector<128x256xf32>
    %2 = tpu.matmul %0, %1, %cst {dimension_numbers = #tpu.dot_dimension_numbers<[1], [0], [0], [1], [0, 0, 1, 1], [], []>} : vector<128x16xbf16>, vector<16x256xbf16>, vector<128x256xf32> -> vector<128x256xf32>
    %c0_3 = arith.constant 0 : index
    %c0_4 = arith.constant 0 : index
    %3 = vector.load %arg2[%c0_3, %c0_4] : memref<1x256xf32, #tpu.memory_space<vmem>>, vector<1x256xf32>
    %4 = vector.broadcast %3 : vector<1x256xf32> to vector<128x256xf32>
    %5 = arith.addf %2, %4 : vector<128x256xf32>
    %c0_5 = arith.constant 0 : index
    %c0_6 = arith.constant 0 : index
    %6 = vector.load %arg3[%c0_5, %c0_6] : memref<64x256xbf16, #tpu.memory_space<vmem>>, vector<64x256xbf16>
    %c0_7 = arith.constant 0 : index
    %c0_8 = arith.constant 0 : index
    %7 = vector.load %arg5[%c0_7, %c0_8] : memref<1x128xf32, #tpu.memory_space<vmem>>, vector<1x128xf32>
    %cst_9 = arith.constant 1.000000e+00 : f32
    %8 = vector.broadcast %cst_9 : f32 to vector<1x32xf32>
    %cst_10 = arith.constant 0.000000e+00 : f32
    %9 = vector.broadcast %cst_10 : f32 to vector<1x32xf32>
    %10 = tpu.concatenate %8, %9 in 1 : vector<1x32xf32>, vector<1x32xf32> -> vector<1x64xf32>
    %11 = vector.extract_strided_slice %5 {offsets = [0, 0], sizes = [16, 256], strides = [1, 1]} : vector<128x256xf32> to vector<16x256xf32>
    %cst_11 = arith.constant 0.000000e+00 : f32
    %12 = vector.broadcast %cst_11 : f32 to vector<16x64xf32>
    %13 = math.tanh %11 : vector<16x256xf32>
    %14 = vector.extract_strided_slice %13 {offsets = [0, 0], sizes = [16, 64], strides = [1, 1]} : vector<16x256xf32> to vector<16x64xf32>
    %cst_12 = arith.constant 5.000000e-01 : f32
    %15 = vector.broadcast %cst_12 : f32 to vector<16x64xf32>
    %16 = arith.mulf %15, %14 : vector<16x64xf32>
    %cst_13 = arith.constant 5.000000e-01 : f32
    %17 = vector.broadcast %cst_13 : f32 to vector<16x64xf32>
    %18 = arith.addf %16, %17 : vector<16x64xf32>
    %19 = vector.extract_strided_slice %13 {offsets = [0, 64], sizes = [16, 64], strides = [1, 1]} : vector<16x256xf32> to vector<16x64xf32>
    %cst_14 = arith.constant 5.000000e-01 : f32
    %20 = vector.broadcast %cst_14 : f32 to vector<16x64xf32>
    %21 = arith.mulf %20, %19 : vector<16x64xf32>
    %cst_15 = arith.constant 5.000000e-01 : f32
    %22 = vector.broadcast %cst_15 : f32 to vector<16x64xf32>
    %23 = arith.addf %21, %22 : vector<16x64xf32>
    %24 = vector.extract_strided_slice %13 {offsets = [0, 128], sizes = [16, 64], strides = [1, 1]} : vector<16x256xf32> to vector<16x64xf32>
    %25 = vector.extract_strided_slice %13 {offsets = [0, 192], sizes = [16, 64], strides = [1, 1]} : vector<16x256xf32> to vector<16x64xf32>
    %cst_16 = arith.constant 5.000000e-01 : f32
    %26 = vector.broadcast %cst_16 : f32 to vector<16x64xf32>
    %27 = arith.mulf %26, %25 : vector<16x64xf32>
    %cst_17 = arith.constant 5.000000e-01 : f32
    %28 = vector.broadcast %cst_17 : f32 to vector<16x64xf32>
    %29 = arith.addf %27, %28 : vector<16x64xf32>
    %30 = arith.mulf %23, %12 : vector<16x64xf32>
    %31 = arith.mulf %18, %24 : vector<16x64xf32>
    %32 = arith.addf %30, %31 : vector<16x64xf32>
    %33 = math.tanh %32 : vector<16x64xf32>
    %34 = arith.mulf %29, %33 : vector<16x64xf32>
    %35 = vector.broadcast %10 : vector<1x64xf32> to vector<16x64xf32>
    %36 = arith.mulf %32, %35 : vector<16x64xf32>
    %37 = vector.broadcast %10 : vector<1x64xf32> to vector<16x64xf32>
    %38 = arith.mulf %34, %37 : vector<16x64xf32>
    %39 = arith.truncf %38 : vector<16x64xf32> to vector<16x64xbf16>
    %40 = vector.extract_strided_slice %5 {offsets = [16, 0], sizes = [16, 256], strides = [1, 1]} : vector<128x256xf32> to vector<16x256xf32>
    %cst_18 = arith.constant dense<0.000000e+00> : vector<16x256xf32>
    %41 = tpu.matmul %39, %6, %cst_18 {dimension_numbers = #tpu.dot_dimension_numbers<[1], [0], [0], [1], [0, 0, 1, 1], [], []>} : vector<16x64xbf16>, vector<64x256xbf16>, vector<16x256xf32> -> vector<16x256xf32>
    %42 = arith.addf %40, %41 : vector<16x256xf32>
    %43 = math.tanh %42 : vector<16x256xf32>
    %44 = vector.extract_strided_slice %43 {offsets = [0, 0], sizes = [16, 64], strides = [1, 1]} : vector<16x256xf32> to vector<16x64xf32>
    %cst_19 = arith.constant 5.000000e-01 : f32
    %45 = vector.broadcast %cst_19 : f32 to vector<16x64xf32>
    %46 = arith.mulf %45, %44 : vector<16x64xf32>
    %cst_20 = arith.constant 5.000000e-01 : f32
    %47 = vector.broadcast %cst_20 : f32 to vector<16x64xf32>
    %48 = arith.addf %46, %47 : vector<16x64xf32>
    %49 = vector.extract_strided_slice %43 {offsets = [0, 64], sizes = [16, 64], strides = [1, 1]} : vector<16x256xf32> to vector<16x64xf32>
    %cst_21 = arith.constant 5.000000e-01 : f32
    %50 = vector.broadcast %cst_21 : f32 to vector<16x64xf32>
    %51 = arith.mulf %50, %49 : vector<16x64xf32>
    %cst_22 = arith.constant 5.000000e-01 : f32
    %52 = vector.broadcast %cst_22 : f32 to vector<16x64xf32>
    %53 = arith.addf %51, %52 : vector<16x64xf32>
    %54 = vector.extract_strided_slice %43 {offsets = [0, 128], sizes = [16, 64], strides = [1, 1]} : vector<16x256xf32> to vector<16x64xf32>
    %55 = vector.extract_strided_slice %43 {offsets = [0, 192], sizes = [16, 64], strides = [1, 1]} : vector<16x256xf32> to vector<16x64xf32>
    %cst_23 = arith.constant 5.000000e-01 : f32
    %56 = vector.broadcast %cst_23 : f32 to vector<16x64xf32>
    %57 = arith.mulf %56, %55 : vector<16x64xf32>
    %cst_24 = arith.constant 5.000000e-01 : f32
    %58 = vector.broadcast %cst_24 : f32 to vector<16x64xf32>
    %59 = arith.addf %57, %58 : vector<16x64xf32>
    %60 = arith.mulf %53, %36 : vector<16x64xf32>
    %61 = arith.mulf %48, %54 : vector<16x64xf32>
    %62 = arith.addf %60, %61 : vector<16x64xf32>
    %63 = math.tanh %62 : vector<16x64xf32>
    %64 = arith.mulf %59, %63 : vector<16x64xf32>
    %65 = arith.truncf %64 : vector<16x64xf32> to vector<16x64xbf16>
    %66 = vector.extract_strided_slice %5 {offsets = [32, 0], sizes = [16, 256], strides = [1, 1]} : vector<128x256xf32> to vector<16x256xf32>
    %cst_25 = arith.constant dense<0.000000e+00> : vector<16x256xf32>
    %67 = tpu.matmul %65, %6, %cst_25 {dimension_numbers = #tpu.dot_dimension_numbers<[1], [0], [0], [1], [0, 0, 1, 1], [], []>} : vector<16x64xbf16>, vector<64x256xbf16>, vector<16x256xf32> -> vector<16x256xf32>
    %68 = arith.addf %66, %67 : vector<16x256xf32>
    %69 = math.tanh %68 : vector<16x256xf32>
    %70 = vector.extract_strided_slice %69 {offsets = [0, 0], sizes = [16, 64], strides = [1, 1]} : vector<16x256xf32> to vector<16x64xf32>
    %cst_26 = arith.constant 5.000000e-01 : f32
    %71 = vector.broadcast %cst_26 : f32 to vector<16x64xf32>
    %72 = arith.mulf %71, %70 : vector<16x64xf32>
    %cst_27 = arith.constant 5.000000e-01 : f32
    %73 = vector.broadcast %cst_27 : f32 to vector<16x64xf32>
    %74 = arith.addf %72, %73 : vector<16x64xf32>
    %75 = vector.extract_strided_slice %69 {offsets = [0, 64], sizes = [16, 64], strides = [1, 1]} : vector<16x256xf32> to vector<16x64xf32>
    %cst_28 = arith.constant 5.000000e-01 : f32
    %76 = vector.broadcast %cst_28 : f32 to vector<16x64xf32>
    %77 = arith.mulf %76, %75 : vector<16x64xf32>
    %cst_29 = arith.constant 5.000000e-01 : f32
    %78 = vector.broadcast %cst_29 : f32 to vector<16x64xf32>
    %79 = arith.addf %77, %78 : vector<16x64xf32>
    %80 = vector.extract_strided_slice %69 {offsets = [0, 128], sizes = [16, 64], strides = [1, 1]} : vector<16x256xf32> to vector<16x64xf32>
    %81 = vector.extract_strided_slice %69 {offsets = [0, 192], sizes = [16, 64], strides = [1, 1]} : vector<16x256xf32> to vector<16x64xf32>
    %cst_30 = arith.constant 5.000000e-01 : f32
    %82 = vector.broadcast %cst_30 : f32 to vector<16x64xf32>
    %83 = arith.mulf %82, %81 : vector<16x64xf32>
    %cst_31 = arith.constant 5.000000e-01 : f32
    %84 = vector.broadcast %cst_31 : f32 to vector<16x64xf32>
    %85 = arith.addf %83, %84 : vector<16x64xf32>
    %86 = arith.mulf %79, %62 : vector<16x64xf32>
    %87 = arith.mulf %74, %80 : vector<16x64xf32>
    %88 = arith.addf %86, %87 : vector<16x64xf32>
    %89 = math.tanh %88 : vector<16x64xf32>
    %90 = arith.mulf %85, %89 : vector<16x64xf32>
    %91 = arith.truncf %90 : vector<16x64xf32> to vector<16x64xbf16>
    %92 = vector.extract_strided_slice %5 {offsets = [48, 0], sizes = [16, 256], strides = [1, 1]} : vector<128x256xf32> to vector<16x256xf32>
    %cst_32 = arith.constant dense<0.000000e+00> : vector<16x256xf32>
    %93 = tpu.matmul %91, %6, %cst_32 {dimension_numbers = #tpu.dot_dimension_numbers<[1], [0], [0], [1], [0, 0, 1, 1], [], []>} : vector<16x64xbf16>, vector<64x256xbf16>, vector<16x256xf32> -> vector<16x256xf32>
    %94 = arith.addf %92, %93 : vector<16x256xf32>
    %95 = math.tanh %94 : vector<16x256xf32>
    %96 = vector.extract_strided_slice %95 {offsets = [0, 0], sizes = [16, 64], strides = [1, 1]} : vector<16x256xf32> to vector<16x64xf32>
    %cst_33 = arith.constant 5.000000e-01 : f32
    %97 = vector.broadcast %cst_33 : f32 to vector<16x64xf32>
    %98 = arith.mulf %97, %96 : vector<16x64xf32>
    %cst_34 = arith.constant 5.000000e-01 : f32
    %99 = vector.broadcast %cst_34 : f32 to vector<16x64xf32>
    %100 = arith.addf %98, %99 : vector<16x64xf32>
    %101 = vector.extract_strided_slice %95 {offsets = [0, 64], sizes = [16, 64], strides = [1, 1]} : vector<16x256xf32> to vector<16x64xf32>
    %cst_35 = arith.constant 5.000000e-01 : f32
    %102 = vector.broadcast %cst_35 : f32 to vector<16x64xf32>
    %103 = arith.mulf %102, %101 : vector<16x64xf32>
    %cst_36 = arith.constant 5.000000e-01 : f32
    %104 = vector.broadcast %cst_36 : f32 to vector<16x64xf32>
    %105 = arith.addf %103, %104 : vector<16x64xf32>
    %106 = vector.extract_strided_slice %95 {offsets = [0, 128], sizes = [16, 64], strides = [1, 1]} : vector<16x256xf32> to vector<16x64xf32>
    %107 = vector.extract_strided_slice %95 {offsets = [0, 192], sizes = [16, 64], strides = [1, 1]} : vector<16x256xf32> to vector<16x64xf32>
    %cst_37 = arith.constant 5.000000e-01 : f32
    %108 = vector.broadcast %cst_37 : f32 to vector<16x64xf32>
    %109 = arith.mulf %108, %107 : vector<16x64xf32>
    %cst_38 = arith.constant 5.000000e-01 : f32
    %110 = vector.broadcast %cst_38 : f32 to vector<16x64xf32>
    %111 = arith.addf %109, %110 : vector<16x64xf32>
    %112 = arith.mulf %105, %88 : vector<16x64xf32>
    %113 = arith.mulf %100, %106 : vector<16x64xf32>
    %114 = arith.addf %112, %113 : vector<16x64xf32>
    %115 = math.tanh %114 : vector<16x64xf32>
    %116 = arith.mulf %111, %115 : vector<16x64xf32>
    %117 = arith.truncf %116 : vector<16x64xf32> to vector<16x64xbf16>
    %118 = vector.extract_strided_slice %5 {offsets = [64, 0], sizes = [16, 256], strides = [1, 1]} : vector<128x256xf32> to vector<16x256xf32>
    %cst_39 = arith.constant dense<0.000000e+00> : vector<16x256xf32>
    %119 = tpu.matmul %117, %6, %cst_39 {dimension_numbers = #tpu.dot_dimension_numbers<[1], [0], [0], [1], [0, 0, 1, 1], [], []>} : vector<16x64xbf16>, vector<64x256xbf16>, vector<16x256xf32> -> vector<16x256xf32>
    %120 = arith.addf %118, %119 : vector<16x256xf32>
    %121 = math.tanh %120 : vector<16x256xf32>
    %122 = vector.extract_strided_slice %121 {offsets = [0, 0], sizes = [16, 64], strides = [1, 1]} : vector<16x256xf32> to vector<16x64xf32>
    %cst_40 = arith.constant 5.000000e-01 : f32
    %123 = vector.broadcast %cst_40 : f32 to vector<16x64xf32>
    %124 = arith.mulf %123, %122 : vector<16x64xf32>
    %cst_41 = arith.constant 5.000000e-01 : f32
    %125 = vector.broadcast %cst_41 : f32 to vector<16x64xf32>
    %126 = arith.addf %124, %125 : vector<16x64xf32>
    %127 = vector.extract_strided_slice %121 {offsets = [0, 64], sizes = [16, 64], strides = [1, 1]} : vector<16x256xf32> to vector<16x64xf32>
    %cst_42 = arith.constant 5.000000e-01 : f32
    %128 = vector.broadcast %cst_42 : f32 to vector<16x64xf32>
    %129 = arith.mulf %128, %127 : vector<16x64xf32>
    %cst_43 = arith.constant 5.000000e-01 : f32
    %130 = vector.broadcast %cst_43 : f32 to vector<16x64xf32>
    %131 = arith.addf %129, %130 : vector<16x64xf32>
    %132 = vector.extract_strided_slice %121 {offsets = [0, 128], sizes = [16, 64], strides = [1, 1]} : vector<16x256xf32> to vector<16x64xf32>
    %133 = vector.extract_strided_slice %121 {offsets = [0, 192], sizes = [16, 64], strides = [1, 1]} : vector<16x256xf32> to vector<16x64xf32>
    %cst_44 = arith.constant 5.000000e-01 : f32
    %134 = vector.broadcast %cst_44 : f32 to vector<16x64xf32>
    %135 = arith.mulf %134, %133 : vector<16x64xf32>
    %cst_45 = arith.constant 5.000000e-01 : f32
    %136 = vector.broadcast %cst_45 : f32 to vector<16x64xf32>
    %137 = arith.addf %135, %136 : vector<16x64xf32>
    %138 = arith.mulf %131, %114 : vector<16x64xf32>
    %139 = arith.mulf %126, %132 : vector<16x64xf32>
    %140 = arith.addf %138, %139 : vector<16x64xf32>
    %141 = math.tanh %140 : vector<16x64xf32>
    %142 = arith.mulf %137, %141 : vector<16x64xf32>
    %143 = arith.truncf %142 : vector<16x64xf32> to vector<16x64xbf16>
    %144 = vector.extract_strided_slice %5 {offsets = [80, 0], sizes = [16, 256], strides = [1, 1]} : vector<128x256xf32> to vector<16x256xf32>
    %cst_46 = arith.constant dense<0.000000e+00> : vector<16x256xf32>
    %145 = tpu.matmul %143, %6, %cst_46 {dimension_numbers = #tpu.dot_dimension_numbers<[1], [0], [0], [1], [0, 0, 1, 1], [], []>} : vector<16x64xbf16>, vector<64x256xbf16>, vector<16x256xf32> -> vector<16x256xf32>
    %146 = arith.addf %144, %145 : vector<16x256xf32>
    %147 = math.tanh %146 : vector<16x256xf32>
    %148 = vector.extract_strided_slice %147 {offsets = [0, 0], sizes = [16, 64], strides = [1, 1]} : vector<16x256xf32> to vector<16x64xf32>
    %cst_47 = arith.constant 5.000000e-01 : f32
    %149 = vector.broadcast %cst_47 : f32 to vector<16x64xf32>
    %150 = arith.mulf %149, %148 : vector<16x64xf32>
    %cst_48 = arith.constant 5.000000e-01 : f32
    %151 = vector.broadcast %cst_48 : f32 to vector<16x64xf32>
    %152 = arith.addf %150, %151 : vector<16x64xf32>
    %153 = vector.extract_strided_slice %147 {offsets = [0, 64], sizes = [16, 64], strides = [1, 1]} : vector<16x256xf32> to vector<16x64xf32>
    %cst_49 = arith.constant 5.000000e-01 : f32
    %154 = vector.broadcast %cst_49 : f32 to vector<16x64xf32>
    %155 = arith.mulf %154, %153 : vector<16x64xf32>
    %cst_50 = arith.constant 5.000000e-01 : f32
    %156 = vector.broadcast %cst_50 : f32 to vector<16x64xf32>
    %157 = arith.addf %155, %156 : vector<16x64xf32>
    %158 = vector.extract_strided_slice %147 {offsets = [0, 128], sizes = [16, 64], strides = [1, 1]} : vector<16x256xf32> to vector<16x64xf32>
    %159 = vector.extract_strided_slice %147 {offsets = [0, 192], sizes = [16, 64], strides = [1, 1]} : vector<16x256xf32> to vector<16x64xf32>
    %cst_51 = arith.constant 5.000000e-01 : f32
    %160 = vector.broadcast %cst_51 : f32 to vector<16x64xf32>
    %161 = arith.mulf %160, %159 : vector<16x64xf32>
    %cst_52 = arith.constant 5.000000e-01 : f32
    %162 = vector.broadcast %cst_52 : f32 to vector<16x64xf32>
    %163 = arith.addf %161, %162 : vector<16x64xf32>
    %164 = arith.mulf %157, %140 : vector<16x64xf32>
    %165 = arith.mulf %152, %158 : vector<16x64xf32>
    %166 = arith.addf %164, %165 : vector<16x64xf32>
    %167 = math.tanh %166 : vector<16x64xf32>
    %168 = arith.mulf %163, %167 : vector<16x64xf32>
    %169 = arith.truncf %168 : vector<16x64xf32> to vector<16x64xbf16>
    %170 = vector.extract_strided_slice %5 {offsets = [96, 0], sizes = [16, 256], strides = [1, 1]} : vector<128x256xf32> to vector<16x256xf32>
    %cst_53 = arith.constant dense<0.000000e+00> : vector<16x256xf32>
    %171 = tpu.matmul %169, %6, %cst_53 {dimension_numbers = #tpu.dot_dimension_numbers<[1], [0], [0], [1], [0, 0, 1, 1], [], []>} : vector<16x64xbf16>, vector<64x256xbf16>, vector<16x256xf32> -> vector<16x256xf32>
    %172 = arith.addf %170, %171 : vector<16x256xf32>
    %173 = math.tanh %172 : vector<16x256xf32>
    %174 = vector.extract_strided_slice %173 {offsets = [0, 0], sizes = [16, 64], strides = [1, 1]} : vector<16x256xf32> to vector<16x64xf32>
    %cst_54 = arith.constant 5.000000e-01 : f32
    %175 = vector.broadcast %cst_54 : f32 to vector<16x64xf32>
    %176 = arith.mulf %175, %174 : vector<16x64xf32>
    %cst_55 = arith.constant 5.000000e-01 : f32
    %177 = vector.broadcast %cst_55 : f32 to vector<16x64xf32>
    %178 = arith.addf %176, %177 : vector<16x64xf32>
    %179 = vector.extract_strided_slice %173 {offsets = [0, 64], sizes = [16, 64], strides = [1, 1]} : vector<16x256xf32> to vector<16x64xf32>
    %cst_56 = arith.constant 5.000000e-01 : f32
    %180 = vector.broadcast %cst_56 : f32 to vector<16x64xf32>
    %181 = arith.mulf %180, %179 : vector<16x64xf32>
    %cst_57 = arith.constant 5.000000e-01 : f32
    %182 = vector.broadcast %cst_57 : f32 to vector<16x64xf32>
    %183 = arith.addf %181, %182 : vector<16x64xf32>
    %184 = vector.extract_strided_slice %173 {offsets = [0, 128], sizes = [16, 64], strides = [1, 1]} : vector<16x256xf32> to vector<16x64xf32>
    %185 = vector.extract_strided_slice %173 {offsets = [0, 192], sizes = [16, 64], strides = [1, 1]} : vector<16x256xf32> to vector<16x64xf32>
    %cst_58 = arith.constant 5.000000e-01 : f32
    %186 = vector.broadcast %cst_58 : f32 to vector<16x64xf32>
    %187 = arith.mulf %186, %185 : vector<16x64xf32>
    %cst_59 = arith.constant 5.000000e-01 : f32
    %188 = vector.broadcast %cst_59 : f32 to vector<16x64xf32>
    %189 = arith.addf %187, %188 : vector<16x64xf32>
    %190 = arith.mulf %183, %166 : vector<16x64xf32>
    %191 = arith.mulf %178, %184 : vector<16x64xf32>
    %192 = arith.addf %190, %191 : vector<16x64xf32>
    %193 = math.tanh %192 : vector<16x64xf32>
    %194 = arith.mulf %189, %193 : vector<16x64xf32>
    %195 = arith.truncf %194 : vector<16x64xf32> to vector<16x64xbf16>
    %196 = vector.extract_strided_slice %5 {offsets = [112, 0], sizes = [16, 256], strides = [1, 1]} : vector<128x256xf32> to vector<16x256xf32>
    %cst_60 = arith.constant dense<0.000000e+00> : vector<16x256xf32>
    %197 = tpu.matmul %195, %6, %cst_60 {dimension_numbers = #tpu.dot_dimension_numbers<[1], [0], [0], [1], [0, 0, 1, 1], [], []>} : vector<16x64xbf16>, vector<64x256xbf16>, vector<16x256xf32> -> vector<16x256xf32>
    %198 = arith.addf %196, %197 : vector<16x256xf32>
    %199 = math.tanh %198 : vector<16x256xf32>
    %200 = vector.extract_strided_slice %199 {offsets = [0, 0], sizes = [16, 64], strides = [1, 1]} : vector<16x256xf32> to vector<16x64xf32>
    %cst_61 = arith.constant 5.000000e-01 : f32
    %201 = vector.broadcast %cst_61 : f32 to vector<16x64xf32>
    %202 = arith.mulf %201, %200 : vector<16x64xf32>
    %cst_62 = arith.constant 5.000000e-01 : f32
    %203 = vector.broadcast %cst_62 : f32 to vector<16x64xf32>
    %204 = arith.addf %202, %203 : vector<16x64xf32>
    %205 = vector.extract_strided_slice %199 {offsets = [0, 64], sizes = [16, 64], strides = [1, 1]} : vector<16x256xf32> to vector<16x64xf32>
    %cst_63 = arith.constant 5.000000e-01 : f32
    %206 = vector.broadcast %cst_63 : f32 to vector<16x64xf32>
    %207 = arith.mulf %206, %205 : vector<16x64xf32>
    %cst_64 = arith.constant 5.000000e-01 : f32
    %208 = vector.broadcast %cst_64 : f32 to vector<16x64xf32>
    %209 = arith.addf %207, %208 : vector<16x64xf32>
    %210 = vector.extract_strided_slice %199 {offsets = [0, 128], sizes = [16, 64], strides = [1, 1]} : vector<16x256xf32> to vector<16x64xf32>
    %211 = vector.extract_strided_slice %199 {offsets = [0, 192], sizes = [16, 64], strides = [1, 1]} : vector<16x256xf32> to vector<16x64xf32>
    %cst_65 = arith.constant 5.000000e-01 : f32
    %212 = vector.broadcast %cst_65 : f32 to vector<16x64xf32>
    %213 = arith.mulf %212, %211 : vector<16x64xf32>
    %cst_66 = arith.constant 5.000000e-01 : f32
    %214 = vector.broadcast %cst_66 : f32 to vector<16x64xf32>
    %215 = arith.addf %213, %214 : vector<16x64xf32>
    %216 = arith.mulf %209, %192 : vector<16x64xf32>
    %217 = arith.mulf %204, %210 : vector<16x64xf32>
    %218 = arith.addf %216, %217 : vector<16x64xf32>
    %219 = math.tanh %218 : vector<16x64xf32>
    %220 = arith.mulf %215, %219 : vector<16x64xf32>
    %221 = arith.truncf %220 : vector<16x64xf32> to vector<16x64xbf16>
    %c0_67 = arith.constant 0 : index
    %c0_68 = arith.constant 0 : index
    %222 = vector.load %arg4[%c0_67, %c0_68] : memref<64x128xbf16, #tpu.memory_space<vmem>>, vector<64x128xbf16>
    %cst_69 = arith.constant dense<0.000000e+00> : vector<16x128xf32>
    %223 = tpu.matmul %221, %222, %cst_69 {dimension_numbers = #tpu.dot_dimension_numbers<[1], [0], [0], [1], [0, 0, 1, 1], [], []>} : vector<16x64xbf16>, vector<64x128xbf16>, vector<16x128xf32> -> vector<16x128xf32>
    %224 = vector.broadcast %7 : vector<1x128xf32> to vector<16x128xf32>
    %225 = arith.addf %223, %224 : vector<16x128xf32>
    %226 = math.tanh %225 : vector<16x128xf32>
    %227 = vector.extract_strided_slice %226 {offsets = [0, 0], sizes = [16, 32], strides = [1, 1]} : vector<16x128xf32> to vector<16x32xf32>
    %cst_70 = arith.constant 5.000000e-01 : f32
    %228 = vector.broadcast %cst_70 : f32 to vector<16x32xf32>
    %229 = arith.mulf %228, %227 : vector<16x32xf32>
    %cst_71 = arith.constant 5.000000e-01 : f32
    %230 = vector.broadcast %cst_71 : f32 to vector<16x32xf32>
    %231 = arith.addf %229, %230 : vector<16x32xf32>
    %232 = vector.extract_strided_slice %226 {offsets = [0, 32], sizes = [16, 32], strides = [1, 1]} : vector<16x128xf32> to vector<16x32xf32>
    %cst_72 = arith.constant 5.000000e-01 : f32
    %233 = vector.broadcast %cst_72 : f32 to vector<16x32xf32>
    %234 = arith.mulf %233, %232 : vector<16x32xf32>
    %cst_73 = arith.constant 5.000000e-01 : f32
    %235 = vector.broadcast %cst_73 : f32 to vector<16x32xf32>
    %236 = arith.addf %234, %235 : vector<16x32xf32>
    %237 = vector.extract_strided_slice %226 {offsets = [0, 64], sizes = [16, 32], strides = [1, 1]} : vector<16x128xf32> to vector<16x32xf32>
    %238 = vector.extract_strided_slice %226 {offsets = [0, 96], sizes = [16, 32], strides = [1, 1]} : vector<16x128xf32> to vector<16x32xf32>
    %cst_74 = arith.constant 5.000000e-01 : f32
    %239 = vector.broadcast %cst_74 : f32 to vector<16x32xf32>
    %240 = arith.mulf %239, %238 : vector<16x32xf32>
    %cst_75 = arith.constant 5.000000e-01 : f32
    %241 = vector.broadcast %cst_75 : f32 to vector<16x32xf32>
    %242 = arith.addf %240, %241 : vector<16x32xf32>
    %243 = vector.extract_strided_slice %218 {offsets = [0, 32], sizes = [16, 32], strides = [1, 1]} : vector<16x64xf32> to vector<16x32xf32>
    %244 = arith.mulf %236, %243 : vector<16x32xf32>
    %245 = arith.mulf %231, %237 : vector<16x32xf32>
    %246 = arith.addf %244, %245 : vector<16x32xf32>
    %247 = math.tanh %246 : vector<16x32xf32>
    %248 = arith.mulf %242, %247 : vector<16x32xf32>
    %c0_76 = arith.constant 0 : index
    %c0_77 = arith.constant 0 : index
    %249 = vector.load %arg6[%c0_76, %c0_77] : memref<1x32xf32, #tpu.memory_space<vmem>>, vector<1x32xf32>
    %250 = vector.broadcast %249 : vector<1x32xf32> to vector<16x32xf32>
    %251 = arith.mulf %248, %250 : vector<16x32xf32>
    %cst_78 = arith.constant dense<0.000000e+00> : vector<16xf32>
    %252 = vector.multi_reduction <add>, %251, %cst_78 [1] : vector<16x32xf32> to vector<16xf32>
    %253 = vector.shape_cast %252 : vector<16xf32> to vector<16x1xf32>
    %c0_79 = arith.constant 0 : index
    %c0_80 = arith.constant 0 : index
    %254 = vector.load %arg7[%c0_79, %c0_80] : memref<1x1xf32, #tpu.memory_space<vmem>>, vector<1x1xf32>
    %255 = vector.broadcast %254 : vector<1x1xf32> to vector<16x1xf32>
    %256 = arith.addf %253, %255 : vector<16x1xf32>
    %cst_81 = arith.constant 5.000000e-01 : f32
    %257 = vector.broadcast %cst_81 : f32 to vector<16x1xf32>
    %258 = arith.mulf %257, %256 : vector<16x1xf32>
    %259 = math.tanh %258 : vector<16x1xf32>
    %cst_82 = arith.constant 1.000000e+00 : f32
    %260 = vector.broadcast %cst_82 : f32 to vector<16x1xf32>
    %261 = arith.addf %259, %260 : vector<16x1xf32>
    %cst_83 = arith.constant 5.000000e-01 : f32
    %262 = vector.broadcast %cst_83 : f32 to vector<16x1xf32>
    %263 = arith.mulf %262, %261 : vector<16x1xf32>
    %c0_84 = arith.constant 0 : index
    %c0_85 = arith.constant 0 : index
    %264 = vector.load %arg8[%c0_84, %c0_85] : memref<16x1xf32, #tpu.memory_space<vmem>>, vector<16x1xf32>
    tpu.vector_store %arg8[%c0_84, %c0_85], %263 {strides = array<i32>} : memref<16x1xf32, #tpu.memory_space<vmem>>, vector<16x1xf32>,
    return
  }
}

</mosaic_0001>

<bundles_post_ra>
// kernel: tpu_custom_call.1
= control target key start
LH: loop header
LB: loop body
LE: loop exit
PB: predicated region body
PF: predicated region fallthrough
CT: control target
= control target key end

     0   :  { %s1805_s0 = inlined_call_operand.vmem [shape: bf16[128,16], index: 0, kind: input, shape index: {}]   ;;  %s1806_s1 = inlined_call_operand.vmem [shape: bf16[16,256], index: 1, kind: input, shape index: {}]   ;;  %s1807_s2 = inlined_call_operand.vmem [shape: f32[1,256], index: 2, kind: input, shape index: {}]   ;;  %s1808_s3 = inlined_call_operand.vmem [shape: bf16[64,256], index: 3, kind: input, shape index: {}]   ;;  %s1809_s4 = inlined_call_operand.hbm [shape: bf16[64,128], index: 4, kind: input, shape index: {}]   ;;  %s1810_s5 = inlined_call_operand.vmem [shape: f32[1,128], index: 5, kind: input, shape index: {}]   ;;  %s1811_s6 = inlined_call_operand.vmem [shape: f32[1,32], index: 6, kind: input, shape index: {}]   ;;  %s1812_s7 = inlined_call_operand.<no memory space> [shape: f32[1,1], index: 7, kind: input, shape index: {}]   ;;  %s1813_s8 = inlined_call_operand.vmem [shape: f32[16,1], index: 8, kind: output, shape index: {}]  }
   0x1   :  { %v13_v0 = vstv %s1812_s7 }
   0x2   :  { %14 = vst [vmem:[#allocation2] sm:$0x1] %v13_v0 }
   0x3   :  { %15 = vsyncpa [#allocation4], 0  ;;  %s1411_s29 = smov [#allocation3]   ;;  %s1387_s11 = scalar_lea.hbm %s1809_s4, 512 }
   0x4   :  { %s29_s30 = sshll.u32 %s1411_s29, 4  ;;  %p1388_p0 = scmp.ne.s32.totalorder %s1809_s4, %s1387_s11  ;;  %s30_s30 = int_to_ptr.vmem [resolvable:$true] %s29_s30 }
   0x5   :  { %p1391_p1 = scmp.lt.u32.totalorder %s1387_s11, %s1809_s4 }
   0x7   :  { %p1393_p2 = pnand %p1391_p1, %p1388_p0 }
   0x9   :  { %1396 = shalt.err (!%p1393_p2)
}
   0xa   :  { %s1397_s7 = scalar_lea.vmem %s30_s30, 512  ;;  %p1402_p4 = scmp.lt.s32.totalorder %s30_s30, %s30_s30 }
   0xb   :  { %p1398_p3 = scmp.ne.s32.totalorder %s30_s30, %s1397_s7  ;;  %p1403_p5 = scmp.lt.s32.totalorder %s1397_s7, %s1397_s7 }
   0xd   :  { %p1404_p6 = por %p1403_p5, %p1402_p4 }
   0xf   :  { %p1405_p7 = pnand %p1404_p6, %p1398_p3 }
  0x11   :  { %1408 = shalt.err (!%p1405_p7)
}
  0x12   :  { %s1412_s16 = smov 64   ;;  %s1413_s17 = smov 4  }
  0x13   :  { %35 = dma.hbm_to_vmem [thread:$0]  %s1809_s4, 512, %s30_s30, [#allocation4], %s1412_s16, %s1412_s16, %s1413_s17  }
  0x14   :  { %1409 = dma.done.wait [#allocation4], 512  }
  0x15   :  { %1410 = vsyncadd [#allocation4], 4294966784  ;;  %v1414_v1 = vmov 0   ;;  %v1252_v2 = vld [vmem:[%s1806_s1 + $0x4] ss:$8 sps:$4 sm:$0xff]   ;;  %vm126_vm0 = vcmask 130048   ;;  %v66_v5 = vlaneseq }
  0x16   :  { %183 = vmatprep.mubr.bf16.mxu1 %v1414_v1  ;;  %481 = vmatprep.mubr.bf16.mxu0 %v1414_v1  ;;  %v1254_v3 = vld [vmem:[%s1806_s1] ss:$8 sps:$4 sm:$0xff]   ;;  %vm273_vm1 = vcmask 261120   ;;  %v1415_v8 = vmov 0.0   ;;  %v1513_v33 = vld [vmem:[%s1808_s3 + $0x4] ss:$8 sps:$4 sm:$0xff]  }
  0x17   :  { %151 = vmatprep.subr.bf16.mxu1 %v1252_v2  ;;  %v1255_v4 = vld [vmem:[%s1805_s0] sm:$0xff]   ;;  %v67_v6 = vshrl.u32 %v66_v5, 7  ;;  %v274_v9 = vsel %vm273_vm1, 1.0, %v1415_v8  ;;  %v1259_v35 = vld [vmem:[%s1805_s0 + $0x8] sm:$0xff]   ;;  %v1526_v36 = vld [vmem:[%s1808_s3 + $0x14] ss:$8 sps:$4 sm:$0xff]   ;;  %449 = vmatprep.subr.bf16.mxu0 %v1513_v33 }
  0x18   :  { %152 = vmatpush1.bf16.msra.mxu1 %v1254_v3  ;;  %v64_v11 = vld [vmem:[%s1807_s2] sm:$0x3]  ;;  %v1535_v37 = vld [vmem:[%s1808_s3 + $0x10] ss:$8 sps:$4 sm:$0xff]   ;;  %v1541_v38 = vld [vmem:[%s1808_s3 + $0x24] ss:$8 sps:$4 sm:$0xff]  }
  0x19   :  { %v68_v7 = vsub.s32 0, %v67_v6  ;;  %v72_v12 = vsub.s32 1, %v67_v6  ;;  %v1518_v34 = vld [vmem:[%s1808_s3] ss:$8 sps:$4 sm:$0xff]   ;;  %365 = vmatprep.subr.bf16.mxu1 %v1513_v33  ;;  %v1260_v39 = vld [vmem:[%s1805_s0 + $0x10] sm:$0xff]   ;;  %v1264_v43 = vld [vmem:[%s1805_s0 + $0x18] sm:$0xff]  }
  0x1a   :  { %450 = vmatpush1.bf16.msra.mxu0 %v1518_v34  ;;  %v1553_v40 = vld [vmem:[%s1808_s3 + $0x20] ss:$8 sps:$4 sm:$0xff]   ;;  %v1559_v41 = vld [vmem:[%s1808_s3 + $0x34] ss:$8 sps:$4 sm:$0xff]   ;;  %v1569_v42 = vld [vmem:[%s1808_s3 + $0x30] ss:$8 sps:$4 sm:$0xff]  }
  0x1b   :  { %1140 = vmatmul.mubr.msk.bf16.vlgmr.msra.gmra.mrb[0].mxu1 %vm126_vm0, %v1255_v4  ;;  %v308_v10 = vrot.slane %v274_v9, %v68_v7  ;;  %v1500_v13 = vrot.slane %v64_v11, %v68_v7  ;;  %v1502_v14 = vrot.slane %v64_v11, %v72_v12  ;;  %451 = vmatprep.subr.bf16.mxu0 %v1526_v36  ;;  %v1265_v44 = vld [vmem:[%s1805_s0 + $0x20] sm:$0xff]   ;;  %v1269_v45 = vld [vmem:[%s1805_s0 + $0x28] sm:$0xff]   ;;  %v1270_v46 = vld [vmem:[%s1805_s0 + $0x30] sm:$0xff]   ;;  %vm361_vm2 = vcmask 523264   ;;  %s1418_s10 = smov 96  }
  0x1c   :  { %193 = vmatprep.mubr.bf16.mxu1 %v1414_v1  ;;  %366 = vmatpush1.bf16.msra.mxu1 %v1518_v34  ;;  %v1274_v47 = vld [vmem:[%s1805_s0 + $0x38] sm:$0xff]   ;;  %vm1416_vm3 = vmmov 0   ;;  %vm1122_vm4 = vcmask 7168  }
  0x1d   :  { %310 = vrot.lane.b32.xlu1 %v308_v10, %s1412_s16  ;;  %367 = vmatprep.subr.bf16.mxu1 %v1526_v36 }
  0x1e   :  { %452 = vmatpush1.bf16.msra.mxu0 %v1535_v37 }
  0x1f   :  { %453 = vmatprep.subr.bf16.mxu0 %v1541_v38 }
  0x20   :  { %368 = vmatpush1.bf16.msra.mxu1 %v1535_v37 }
  0x21   :  { %369 = vmatprep.subr.bf16.mxu1 %v1541_v38 }
  0x22   :  { %454 = vmatpush1.bf16.msra.mxu0 %v1553_v40 }
  0x23   :  { %1141 = vmatmul.mubr.msk.bf16.gmra.mrb[4].mxu1 %vm126_vm0, %v1259_v35  ;;  %455 = vmatprep.subr.bf16.mxu0 %v1559_v41 }
  0x24   :  { %203 = vmatprep.mubr.bf16.mxu1 %v1414_v1  ;;  %370 = vmatpush1.bf16.msra.mxu1 %v1553_v40 }
  0x25   :  { %371 = vmatprep.subr.bf16.mxu1 %v1559_v41 }
  0x26   :  { %456 = vmatpush1.bf16.msra.mxu0 %v1569_v42 }
  0x27   :  { %533 = vmatprep.subr.bf16.mxu0 %v1513_v33 }
  0x28   :  { %372 = vmatpush1.bf16.msra.mxu1 %v1569_v42 }
  0x29   :  { %1176 = vmatprep.subr.bf16.mxu1 %v1415_v8 }
  0x2b   :  { %1142 = vmatmul.mubr.msk.bf16.gmra.mrb[8].mxu1 %vm126_vm0, %v1260_v39 }
  0x2c   :  { %213 = vmatprep.mubr.bf16.mxu1 %v1414_v1 }
  0x33   :  { %1143 = vmatmul.mubr.msk.bf16.gmra.mrb[12].mxu1 %vm126_vm0, %v1264_v43 }
  0x34   :  { %223 = vmatprep.mubr.bf16.mxu1 %v1414_v1 }
  0x3b   :  { %1144 = vmatmul.mubr.msk.bf16.gmra.mrb[16].mxu1 %vm126_vm0, %v1265_v44 }
  0x3c   :  { %233 = vmatprep.mubr.bf16.mxu1 %v1414_v1 }
  0x43   :  { %1145 = vmatmul.mubr.msk.bf16.gmra.mrb[20].mxu1 %vm126_vm0, %v1269_v45 }
  0x44   :  { %243 = vmatprep.mubr.bf16.mxu1 %v1414_v1 }
  0x4b   :  { %1146 = vmatmul.mubr.msk.bf16.gmra.mrb[24].mxu1 %vm126_vm0, %v1270_v46 }
  0x4c   :  { %253 = vmatprep.mubr.bf16.mxu1 %v1414_v1 }
  0x53   :  { %1147 = vmatmul.mubr.msk.bf16.gmra.mrb[28].mxu1 %vm126_vm0, %v1274_v47 }
  0x54   :  { %397 = vmatprep.mubr.bf16.mxu1 %v1414_v1 }
  0x8f   :  { %v311_v62 = vpop.permute.xlu1 %310 }
  0xee   :  { %v185_v15 = vpop.f32.mrb[0].mxu1 }
  0xef   :  { %v186_v16 = vadd.f32 %v185_v15, %v1500_v13  ;;  %v187_v17 = vpop.f32.mrb[1].mxu1 }
  0xf0   :  { %v189_v18 = vpop.f32.mrb[2].mxu1  ;;  %v188_v19 = vadd.f32 %v187_v17, %v1502_v14 }
  0xf1   :  { %1279 = vtanh.f32 %v186_v16  ;;  %v190_v20 = vadd.f32 %v189_v18, %v1500_v13  ;;  %v191_v21 = vpop.f32.mrb[3].mxu1 }
  0xf2   :  { %v192_v22 = vadd.f32 %v191_v21, %v1502_v14 }
  0xf3   :  { %1281 = vtanh.f32 %v190_v20 }
  0xf4   :  { %1283 = vtanh.f32 %v188_v19 }
  0xf5   :  { %1285 = vtanh.f32 %v192_v22 }
  0xfb   :  { %v1280_v23 = vpop.eup %1279 }
  0xfc   :  { %v279_v24 = vmul.f32 0.5, %v1280_v23 }
  0xfd   :  { %v1282_v25 = vpop.eup %1281 }
  0xfe   :  { %v280_v26 = vmul.f32 0.5, %v1282_v25  ;;  %v281_v27 = vadd.f32 0.5, %v279_v24  ;;  %v1284_v28 = vpop.eup %1283  ;;  %v1607_v3 = vpop.f32.mrb[8].mxu1 }
  0xff   :  { %v1286_v31 = vpop.eup %1285  ;;  %v283_v54 = vmul.f32 0.5, %v1284_v28  ;;  %v1609_v4 = vpop.f32.mrb[9].mxu1 }
 0x100   :  { %v289_v29 = vmul.f32 %v1284_v28, %v281_v27  ;;  %v282_v30 = vadd.f32 0.5, %v280_v26  ;;  %v287_v48 = vmul.f32 0.0, %v281_v27  ;;  %v284_v55 = vmul.f32 0.5, %v1286_v31  ;;  %v1611_v5 = vpop.f32.mrb[10].mxu1 }
 0x101   :  { %v285_v56 = vadd.f32 0.5, %v283_v54  ;;  %v1613_v6 = vpop.f32.mrb[11].mxu1 }
 0x102   :  { %293 = vrot.lane.b32.xlu0 %v289_v29, %s1412_s16  ;;  %v290_v32 = vmul.f32 %v1286_v31, %v282_v30  ;;  %v288_v51 = vmul.f32 0.0, %v282_v30  ;;  %v286_v59 = vadd.f32 0.5, %v284_v55 }
 0x106   :  { %295 = vrot.lane.b32.xlu0 %v290_v32, %s1412_s16  ;;  %v1615_v7 = vpop.f32.mrb[12].mxu1 }
 0x107   :  { %v1617_v9 = vpop.f32.mrb[13].mxu1 }
 0x108   :  { %v1619_v10 = vpop.f32.mrb[14].mxu1 }
 0x109   :  { %v1621_v11 = vpop.f32.mrb[15].mxu1 }
 0x10e   :  { %v1623_v12 = vpop.f32.mrb[16].mxu1 }
 0x10f   :  { %v1625_v15 = vpop.f32.mrb[17].mxu1 }
 0x110   :  { %v1627_v16 = vpop.f32.mrb[18].mxu1 }
 0x111   :  { %v1629_v17 = vpop.f32.mrb[19].mxu1 }
 0x116   :  { %v1632_v19 = vpop.f32.mrb[20].mxu1 }
 0x117   :  { %v1634_v20 = vpop.f32.mrb[21].mxu1 }
 0x118   :  { %v1636_v21 = vpop.f32.mrb[22].mxu1 }
 0x119   :  { %v1638_v22 = vpop.f32.mrb[23].mxu1 }
 0x11e   :  { %v1640_v23 = vpop.f32.mrb[24].mxu1 }
 0x11f   :  { %v1642_v24 = vpop.f32.mrb[25].mxu1 }
 0x120   :  { %v1644_v25 = vpop.f32.mrb[26].mxu1 }
 0x121   :  { %v1646_v26 = vpop.f32.mrb[27].mxu1 }
 0x126   :  { %v1648_v27 = vpop.f32.mrb[28].mxu1 }
 0x127   :  { %v1650_v28 = vpop.f32.mrb[29].mxu1 }
 0x128   :  { %v1652_v29 = vpop.f32.mrb[30].mxu1 }
 0x129   :  { %v1654_v30 = vpop.f32.mrb[31].mxu1 }
 0x174   :  { %v294_v49 = vpop.permute.xlu0 %293 }
 0x175   :  { %v1603_v50 = vadd.f32 %v294_v49, %v287_v48 }
 0x177   :  { %1287 = vtanh.f32 %v1603_v50  ;;  %v313_v54 = vmul.f32 %v311_v62, %v1603_v50 }
 0x178   :  { %v296_v52 = vpop.permute.xlu0 %295 }
 0x179   :  { %v300_v53 = vadd.f32 %v296_v52, %v288_v51 }
 0x17b   :  { %1289 = vtanh.f32 %v300_v53 }
 0x181   :  { %v1288_v57 = vpop.eup %1287 }
 0x182   :  { %v303_v58 = vmul.f32 %v1288_v57, %v285_v56  ;;  %v314_v56 = vmul.f32 %v311_v62, %v300_v53 }
 0x184   :  { %v315_v63 = vmul.f32 %v311_v62, %v303_v58 }
 0x185   :  { %v1290_v60 = vpop.eup %1289 }
 0x186   :  { %v304_v61 = vmul.f32 %v1290_v60, %v286_v59 }
 0x188   :  { %v316_v0 = vmul.f32 %v311_v62, %v304_v61 }
 0x18a   :  { %v317_v2 = vpack.c.bf16 %v316_v0, %v315_v63 }
 0x18c   :  { %319 = vrot.lane.b32.xlu1 %v317_v2, %s1412_s16 }
 0x1fe   :  { %v320_v18 = vpop.permute.xlu1 %319 }
 0x1ff   :  { %1156 = vmatmul.mubr.msk.bf16.vlgmr.msra.gmra.mrb[4].mxu1 %vm361_vm2, %v320_v18 }
 0x200   :  { %1184 = vmatprep.mubr.msk.bf16.mxu1 %vm1416_vm3, %v1415_v8 }
 0x2d2   :  { %v399_v31 = vpop.f32.mrb[4].mxu1 }
 0x2d3   :  { %v1188_v32 = vadd.f32 %v399_v31, %v1500_v13  ;;  %v401_v35 = vpop.f32.mrb[5].mxu1 }
 0x2d4   :  { %v403_v39 = vpop.f32.mrb[6].mxu1  ;;  %v1189_v43 = vadd.f32 %v401_v35, %v1502_v14 }
 0x2d5   :  { %1291 = vtanh.f32 %v1188_v32  ;;  %v1190_v44 = vadd.f32 %v403_v39, %v1500_v13  ;;  %v405_v45 = vpop.f32.mrb[7].mxu1 }
 0x2d6   :  { %v1191_v46 = vadd.f32 %v405_v45, %v1502_v14 }
 0x2d7   :  { %1293 = vtanh.f32 %v1190_v44 }
 0x2d8   :  { %1295 = vtanh.f32 %v1189_v43 }
 0x2d9   :  { %1297 = vtanh.f32 %v1191_v46 }
 0x2df   :  { %v1292_v47 = vpop.eup %1291 }
 0x2e0   :  { %v416_v48 = vmul.f32 0.5, %v1292_v47  ;;  %v206_v47 = vadd.f32 %v1607_v3, %v1500_v13 }
 0x2e1   :  { %v1294_v49 = vpop.eup %1293 }
 0x2e2   :  { %v417_v51 = vmul.f32 0.5, %v1294_v49  ;;  %v418_v52 = vadd.f32 0.5, %v416_v48  ;;  %v1296_v55 = vpop.eup %1295  ;;  %v208_v48 = vadd.f32 %v1609_v4, %v1502_v14 }
 0x2e3   :  { %v1298_v60 = vpop.eup %1297  ;;  %v420_v32 = vmul.f32 0.5, %v1296_v55 }
 0x2e4   :  { %v426_v57 = vmul.f32 %v1296_v55, %v418_v52  ;;  %v419_v58 = vadd.f32 0.5, %v417_v51  ;;  %v424_v59 = vmul.f32 %v418_v52, %v313_v54  ;;  %v421_v50 = vmul.f32 0.5, %v1298_v60 }
 0x2e5   :  { %v422_v53 = vadd.f32 0.5, %v420_v32  ;;  %v210_v51 = vadd.f32 %v1611_v5, %v1500_v13  ;;  %v212_v55 = vadd.f32 %v1613_v6, %v1502_v14 }
 0x2e6   :  { %430 = vrot.lane.b32.xlu0 %v426_v57, %s1412_s16  ;;  %v427_v61 = vmul.f32 %v1298_v60, %v419_v58  ;;  %v425_v63 = vmul.f32 %v419_v58, %v314_v56  ;;  %v423_v62 = vadd.f32 0.5, %v421_v50 }
 0x2e8   :  { %432 = vrot.lane.b32.xlu1 %v427_v61, %s1412_s16 }
 0x358   :  { %v431_v0 = vpop.permute.xlu0 %430 }
 0x359   :  { %v436_v2 = vadd.f32 %v431_v0, %v424_v59 }
 0x35a   :  { %v433_v18 = vpop.permute.xlu1 %432 }
 0x35b   :  { %1299 = vtanh.f32 %v436_v2  ;;  %v437_v31 = vadd.f32 %v433_v18, %v425_v63 }
 0x35d   :  { %1301 = vtanh.f32 %v437_v31 }
 0x365   :  { %v1300_v35 = vpop.eup %1299 }
 0x366   :  { %v440_v43 = vmul.f32 %v1300_v35, %v422_v53 }
 0x367   :  { %v1302_v39 = vpop.eup %1301 }
 0x368   :  { %v441_v44 = vmul.f32 %v1302_v39, %v423_v62 }
 0x36a   :  { %v442_v45 = vpack.c.bf16 %v441_v44, %v440_v43 }
 0x36c   :  { %444 = vrot.lane.b32.xlu0 %v442_v45, %s1412_s16 }
 0x3de   :  { %v445_v46 = vpop.permute.xlu0 %444 }
 0x3df   :  { %1157 = vmatmul.mubr.msk.bf16.vlgmr.msra.gmra.mrb[0].mxu0 %vm361_vm2, %v445_v46 }
 0x3e0   :  { %534 = vmatpush1.bf16.msra.mxu0 %v1518_v34  ;;  %565 = vmatprep.mubr.bf16.mxu0 %v1414_v1 }
 0x3e1   :  { %535 = vmatprep.subr.bf16.mxu0 %v1526_v36 }
 0x3e4   :  { %536 = vmatpush1.bf16.msra.mxu0 %v1535_v37 }
 0x3e5   :  { %537 = vmatprep.subr.bf16.mxu0 %v1541_v38 }
 0x3e8   :  { %538 = vmatpush1.bf16.msra.mxu0 %v1553_v40 }
 0x3e9   :  { %539 = vmatprep.subr.bf16.mxu0 %v1559_v41 }
 0x3ec   :  { %540 = vmatpush1.bf16.msra.mxu0 %v1569_v42 }
 0x3ed   :  { %617 = vmatprep.subr.bf16.mxu0 %v1513_v33 }
 0x4b2   :  { %v483_v49 = vpop.f32.mrb[0].mxu0 }
 0x4b3   :  { %v492_v52 = vadd.f32 %v483_v49, %v206_v47  ;;  %v485_v54 = vpop.f32.mrb[1].mxu0 }
 0x4b4   :  { %v493_v56 = vadd.f32 %v485_v54, %v208_v48  ;;  %v487_v57 = vpop.f32.mrb[2].mxu0 }
 0x4b5   :  { %1303 = vtanh.f32 %v492_v52  ;;  %v494_v58 = vadd.f32 %v487_v57, %v210_v51  ;;  %v489_v59 = vpop.f32.mrb[3].mxu0 }
 0x4b6   :  { %v495_v60 = vadd.f32 %v489_v59, %v212_v55 }
 0x4b7   :  { %1305 = vtanh.f32 %v494_v58  ;;  %v220_v58 = vadd.f32 %v1619_v10, %v1500_v13 }
 0x4b8   :  { %1307 = vtanh.f32 %v493_v56 }
 0x4b9   :  { %1309 = vtanh.f32 %v495_v60 }
 0x4bf   :  { %v1304_v3 = vpop.eup %1303 }
 0x4c0   :  { %v500_v4 = vmul.f32 0.5, %v1304_v3  ;;  %v222_v3 = vadd.f32 %v1621_v11, %v1502_v14 }
 0x4c1   :  { %v1306_v61 = vpop.eup %1305 }
 0x4c2   :  { %v501_v63 = vmul.f32 0.5, %v1306_v61  ;;  %v502_v0 = vadd.f32 0.5, %v500_v4  ;;  %v1308_v5 = vpop.eup %1307 }
 0x4c3   :  { %v1310_v50 = vpop.eup %1309  ;;  %v504_v45 = vmul.f32 0.5, %v1308_v5 }
 0x4c4   :  { %v510_v18 = vmul.f32 %v1308_v5, %v502_v0  ;;  %v503_v32 = vadd.f32 0.5, %v501_v63  ;;  %v508_v35 = vmul.f32 %v502_v0, %v436_v2  ;;  %v505_v46 = vmul.f32 0.5, %v1310_v50 }
 0x4c5   :  { %v506_v48 = vadd.f32 0.5, %v504_v45  ;;  %v216_v2 = vadd.f32 %v1615_v7, %v1500_v13 }
 0x4c6   :  { %514 = vrot.lane.b32.xlu1 %v510_v18, %s1412_s16  ;;  %v511_v6 = vmul.f32 %v1310_v50, %v503_v32  ;;  %v509_v39 = vmul.f32 %v503_v32, %v437_v31  ;;  %v507_v49 = vadd.f32 0.5, %v505_v46  ;;  %v218_v31 = vadd.f32 %v1617_v9, %v1502_v14 }
 0x4c8   :  { %516 = vrot.lane.b32.xlu0 %v511_v6, %s1412_s16 }
 0x538   :  { %v515_v53 = vpop.permute.xlu1 %514 }
 0x539   :  { %v520_v62 = vadd.f32 %v515_v53, %v508_v35 }
 0x53a   :  { %v517_v43 = vpop.permute.xlu0 %516 }
 0x53b   :  { %1311 = vtanh.f32 %v520_v62  ;;  %v521_v44 = vadd.f32 %v517_v43, %v509_v39 }
 0x53d   :  { %1313 = vtanh.f32 %v521_v44 }
 0x545   :  { %v1312_v47 = vpop.eup %1311 }
 0x546   :  { %v524_v52 = vmul.f32 %v1312_v47, %v506_v48 }
 0x547   :  { %v1314_v51 = vpop.eup %1313 }
 0x548   :  { %v525_v54 = vmul.f32 %v1314_v51, %v507_v49 }
 0x54a   :  { %v526_v55 = vpack.c.bf16 %v525_v54, %v524_v52 }
 0x54c   :  { %528 = vrot.lane.b32.xlu1 %v526_v55, %s1412_s16 }
 0x5be   :  { %v529_v56 = vpop.permute.xlu1 %528 }
 0x5bf   :  { %1158 = vmatmul.mubr.msk.bf16.vlgmr.msra.gmra.mrb[4].mxu0 %vm361_vm2, %v529_v56 }
 0x5c0   :  { %618 = vmatpush1.bf16.msra.mxu0 %v1518_v34  ;;  %649 = vmatprep.mubr.bf16.mxu0 %v1414_v1 }
 0x5c1   :  { %619 = vmatprep.subr.bf16.mxu0 %v1526_v36 }
 0x5c4   :  { %620 = vmatpush1.bf16.msra.mxu0 %v1535_v37 }
 0x5c5   :  { %621 = vmatprep.subr.bf16.mxu0 %v1541_v38 }
 0x5c8   :  { %622 = vmatpush1.bf16.msra.mxu0 %v1553_v40 }
 0x5c9   :  { %623 = vmatprep.subr.bf16.mxu0 %v1559_v41 }
 0x5cc   :  { %624 = vmatpush1.bf16.msra.mxu0 %v1569_v42 }
 0x5cd   :  { %701 = vmatprep.subr.bf16.mxu0 %v1513_v33 }
 0x692   :  { %v567_v57 = vpop.f32.mrb[4].mxu0 }
 0x693   :  { %v576_v59 = vadd.f32 %v567_v57, %v216_v2  ;;  %v569_v60 = vpop.f32.mrb[5].mxu0 }
 0x694   :  { %v577_v4 = vadd.f32 %v569_v60, %v218_v31  ;;  %v571_v61 = vpop.f32.mrb[6].mxu0  ;;  %v230_v60 = vadd.f32 %v1627_v16, %v1500_v13 }
 0x695   :  { %1315 = vtanh.f32 %v576_v59  ;;  %v578_v63 = vadd.f32 %v571_v61, %v220_v58  ;;  %v573_v0 = vpop.f32.mrb[7].mxu0  ;;  %v232_v61 = vadd.f32 %v1629_v17, %v1502_v14 }
 0x696   :  { %v579_v5 = vadd.f32 %v573_v0, %v222_v3 }
 0x697   :  { %1317 = vtanh.f32 %v578_v63 }
 0x698   :  { %1319 = vtanh.f32 %v577_v4 }
 0x699   :  { %1321 = vtanh.f32 %v579_v5 }
 0x69f   :  { %v1316_v7 = vpop.eup %1315 }
 0x6a0   :  { %v584_v9 = vmul.f32 0.5, %v1316_v7 }
 0x6a1   :  { %v1318_v18 = vpop.eup %1317 }
 0x6a2   :  { %v585_v32 = vmul.f32 0.5, %v1318_v18  ;;  %v586_v50 = vadd.f32 0.5, %v584_v9  ;;  %v1320_v10 = vpop.eup %1319 }
 0x6a3   :  { %v1322_v53 = vpop.eup %1321  ;;  %v588_v49 = vmul.f32 0.5, %v1320_v10 }
 0x6a4   :  { %v594_v6 = vmul.f32 %v1320_v10, %v586_v50  ;;  %v587_v35 = vadd.f32 0.5, %v585_v32  ;;  %v592_v39 = vmul.f32 %v586_v50, %v520_v62  ;;  %v589_v51 = vmul.f32 0.5, %v1322_v53 }
 0x6a5   :  { %v590_v54 = vadd.f32 0.5, %v588_v49  ;;  %v226_v62 = vadd.f32 %v1623_v12, %v1500_v13 }
 0x6a6   :  { %598 = vrot.lane.b32.xlu0 %v594_v6, %s1412_s16  ;;  %v595_v11 = vmul.f32 %v1322_v53, %v587_v35  ;;  %v593_v46 = vmul.f32 %v587_v35, %v521_v44  ;;  %v591_v55 = vadd.f32 0.5, %v589_v51  ;;  %v228_v44 = vadd.f32 %v1625_v15, %v1502_v14 }
 0x6a8   :  { %600 = vrot.lane.b32.xlu1 %v595_v11, %s1412_s16 }
 0x718   :  { %v599_v43 = vpop.permute.xlu0 %598 }
 0x719   :  { %v604_v45 = vadd.f32 %v599_v43, %v592_v39 }
 0x71a   :  { %v601_v47 = vpop.permute.xlu1 %600 }
 0x71b   :  { %1323 = vtanh.f32 %v604_v45  ;;  %v605_v48 = vadd.f32 %v601_v47, %v593_v46 }
 0x71d   :  { %1325 = vtanh.f32 %v605_v48 }
 0x725   :  { %v1324_v52 = vpop.eup %1323 }
 0x726   :  { %v608_v2 = vmul.f32 %v1324_v52, %v590_v54 }
 0x727   :  { %v1326_v56 = vpop.eup %1325 }
 0x728   :  { %v609_v31 = vmul.f32 %v1326_v56, %v591_v55 }
 0x72a   :  { %v610_v57 = vpack.c.bf16 %v609_v31, %v608_v2 }
 0x72c   :  { %612 = vrot.lane.b32.xlu0 %v610_v57, %s1412_s16 }
 0x79e   :  { %v613_v58 = vpop.permute.xlu0 %612 }
 0x79f   :  { %1159 = vmatmul.mubr.msk.bf16.vlgmr.msra.gmra.mrb[8].mxu0 %vm361_vm2, %v613_v58 }
 0x7a0   :  { %702 = vmatpush1.bf16.msra.mxu0 %v1518_v34  ;;  %733 = vmatprep.mubr.bf16.mxu0 %v1414_v1 }
 0x7a1   :  { %703 = vmatprep.subr.bf16.mxu0 %v1526_v36 }
 0x7a4   :  { %704 = vmatpush1.bf16.msra.mxu0 %v1535_v37 }
 0x7a5   :  { %705 = vmatprep.subr.bf16.mxu0 %v1541_v38 }
 0x7a8   :  { %706 = vmatpush1.bf16.msra.mxu0 %v1553_v40 }
 0x7a9   :  { %707 = vmatprep.subr.bf16.mxu0 %v1559_v41 }
 0x7ac   :  { %708 = vmatpush1.bf16.msra.mxu0 %v1569_v42 }
 0x7ad   :  { %785 = vmatprep.subr.bf16.mxu0 %v1513_v33 }
 0x872   :  { %v651_v59 = vpop.f32.mrb[8].mxu0 }
 0x873   :  { %v660_v3 = vadd.f32 %v651_v59, %v226_v62  ;;  %v653_v4 = vpop.f32.mrb[9].mxu0 }
 0x874   :  { %v661_v63 = vadd.f32 %v653_v4, %v228_v44  ;;  %v655_v0 = vpop.f32.mrb[10].mxu0  ;;  %v240_v44 = vadd.f32 %v1636_v21, %v1500_v13 }
 0x875   :  { %1327 = vtanh.f32 %v660_v3  ;;  %v662_v5 = vadd.f32 %v655_v0, %v230_v60  ;;  %v657_v7 = vpop.f32.mrb[11].mxu0  ;;  %v242_v3 = vadd.f32 %v1638_v22, %v1502_v14 }
 0x876   :  { %v663_v9 = vadd.f32 %v657_v7, %v232_v61 }
 0x877   :  { %1329 = vtanh.f32 %v662_v5 }
 0x878   :  { %1331 = vtanh.f32 %v661_v63 }
 0x879   :  { %1333 = vtanh.f32 %v663_v9 }
 0x87f   :  { %v1328_v12 = vpop.eup %1327 }
 0x880   :  { %v668_v15 = vmul.f32 0.5, %v1328_v12 }
 0x881   :  { %v1330_v18 = vpop.eup %1329 }
 0x882   :  { %v669_v32 = vmul.f32 0.5, %v1330_v18  ;;  %v670_v50 = vadd.f32 0.5, %v668_v15  ;;  %v1332_v16 = vpop.eup %1331 }
 0x883   :  { %v1334_v35 = vpop.eup %1333  ;;  %v672_v49 = vmul.f32 0.5, %v1332_v16 }
 0x884   :  { %v678_v10 = vmul.f32 %v1332_v16, %v670_v50  ;;  %v671_v6 = vadd.f32 0.5, %v669_v32  ;;  %v676_v53 = vmul.f32 %v670_v50, %v604_v45  ;;  %v673_v51 = vmul.f32 0.5, %v1334_v35 }
 0x885   :  { %v674_v54 = vadd.f32 0.5, %v672_v49  ;;  %v236_v45 = vadd.f32 %v1632_v19, %v1500_v13 }
 0x886   :  { %682 = vrot.lane.b32.xlu1 %v678_v10, %s1412_s16  ;;  %v679_v17 = vmul.f32 %v1334_v35, %v671_v6  ;;  %v677_v43 = vmul.f32 %v671_v6, %v605_v48  ;;  %v675_v55 = vadd.f32 0.5, %v673_v51  ;;  %v238_v48 = vadd.f32 %v1634_v20, %v1502_v14 }
 0x888   :  { %684 = vrot.lane.b32.xlu0 %v679_v17, %s1412_s16 }
 0x8f8   :  { %v683_v11 = vpop.permute.xlu1 %682 }
 0x8f9   :  { %v688_v39 = vadd.f32 %v683_v11, %v676_v53 }
 0x8fa   :  { %v685_v46 = vpop.permute.xlu0 %684 }
 0x8fb   :  { %1335 = vtanh.f32 %v688_v39  ;;  %v689_v47 = vadd.f32 %v685_v46, %v677_v43 }
 0x8fd   :  { %1337 = vtanh.f32 %v689_v47 }
 0x905   :  { %v1336_v52 = vpop.eup %1335 }
 0x906   :  { %v692_v2 = vmul.f32 %v1336_v52, %v674_v54 }
 0x907   :  { %v1338_v56 = vpop.eup %1337 }
 0x908   :  { %v693_v31 = vmul.f32 %v1338_v56, %v675_v55 }
 0x90a   :  { %v694_v57 = vpack.c.bf16 %v693_v31, %v692_v2 }
 0x90c   :  { %696 = vrot.lane.b32.xlu1 %v694_v57, %s1412_s16 }
 0x97e   :  { %v697_v58 = vpop.permute.xlu1 %696 }
 0x97f   :  { %1160 = vmatmul.mubr.msk.bf16.vlgmr.msra.gmra.mrb[12].mxu0 %vm361_vm2, %v697_v58 }
 0x980   :  { %786 = vmatpush1.bf16.msra.mxu0 %v1518_v34  ;;  %817 = vmatprep.mubr.bf16.mxu0 %v1414_v1 }
 0x981   :  { %787 = vmatprep.subr.bf16.mxu0 %v1526_v36 }
 0x984   :  { %788 = vmatpush1.bf16.msra.mxu0 %v1535_v37 }
 0x985   :  { %789 = vmatprep.subr.bf16.mxu0 %v1541_v38 }
 0x988   :  { %790 = vmatpush1.bf16.msra.mxu0 %v1553_v40 }
 0x989   :  { %791 = vmatprep.subr.bf16.mxu0 %v1559_v41 }
 0x98c   :  { %792 = vmatpush1.bf16.msra.mxu0 %v1569_v42 }
 0x98d   :  { %869 = vmatprep.subr.bf16.mxu0 %v1513_v33 }
 0xa52   :  { %v735_v62 = vpop.f32.mrb[12].mxu0 }
 0xa53   :  { %v744_v59 = vadd.f32 %v735_v62, %v236_v45  ;;  %v737_v60 = vpop.f32.mrb[13].mxu0 }
 0xa54   :  { %v745_v4 = vadd.f32 %v737_v60, %v238_v48  ;;  %v739_v61 = vpop.f32.mrb[14].mxu0 }
 0xa55   :  { %1339 = vtanh.f32 %v744_v59  ;;  %v746_v63 = vadd.f32 %v739_v61, %v240_v44  ;;  %v741_v33 = vpop.f32.mrb[15].mxu0 }
 0xa56   :  { %v747_v0 = vadd.f32 %v741_v33, %v242_v3 }
 0xa57   :  { %1341 = vtanh.f32 %v746_v63 }
 0xa58   :  { %1343 = vtanh.f32 %v745_v4 }
 0xa59   :  { %1345 = vtanh.f32 %v747_v0 }
 0xa5f   :  { %v1340_v19 = vpop.eup %1339 }
 0xa60   :  { %v752_v20 = vmul.f32 0.5, %v1340_v19 }
 0xa61   :  { %v1342_v5 = vpop.eup %1341 }
 0xa62   :  { %v753_v7 = vmul.f32 0.5, %v1342_v5  ;;  %v754_v9 = vadd.f32 0.5, %v752_v20  ;;  %v1344_v21 = vpop.eup %1343 }
 0xa63   :  { %v1346_v18 = vpop.eup %1345  ;;  %v756_v17 = vmul.f32 0.5, %v1344_v21 }
 0xa64   :  { %v762_v12 = vmul.f32 %v1344_v21, %v754_v9  ;;  %v755_v15 = vadd.f32 0.5, %v753_v7  ;;  %v760_v32 = vmul.f32 %v754_v9, %v688_v39  ;;  %v757_v53 = vmul.f32 0.5, %v1346_v18 }
 0xa65   :  { %v758_v43 = vadd.f32 0.5, %v756_v17  ;;  %v246_v39 = vadd.f32 %v1640_v23, %v1500_v13 }
 0xa66   :  { %766 = vrot.lane.b32.xlu0 %v762_v12, %s1412_s16  ;;  %v763_v22 = vmul.f32 %v1346_v18, %v755_v15  ;;  %v761_v10 = vmul.f32 %v755_v15, %v689_v47  ;;  %v759_v46 = vadd.f32 0.5, %v757_v53  ;;  %v256_v15 = vadd.f32 %v1648_v27, %v1500_v13 }
 0xa67   :  { %v258_v18 = vadd.f32 %v1650_v28, %v1502_v14 }
 0xa68   :  { %768 = vrot.lane.b32.xlu1 %v763_v22, %s1412_s16 }
 0xad8   :  { %v767_v50 = vpop.permute.xlu0 %766 }
 0xad9   :  { %v772_v16 = vadd.f32 %v767_v50, %v760_v32  ;;  %v260_v32 = vadd.f32 %v1652_v29, %v1500_v13 }
 0xada   :  { %v769_v6 = vpop.permute.xlu1 %768 }
 0xadb   :  { %1347 = vtanh.f32 %v772_v16  ;;  %v773_v35 = vadd.f32 %v769_v6, %v761_v10  ;;  %v262_v10 = vadd.f32 %v1654_v30, %v1502_v14  ;;  %v1275_v30 = vld [vmem:[#allocation3] sm:$0xff]  }
 0xadc   :  { %1177 = vmatpush3.bf16.msra.mxu1 %v1275_v30 }
 0xadd   :  { %1349 = vtanh.f32 %v773_v35  ;;  %1178 = vmatprep.subr.bf16.mxu1 %v1415_v8 }
 0xae5   :  { %v1348_v11 = vpop.eup %1347 }
 0xae6   :  { %v776_v51 = vmul.f32 %v1348_v11, %v758_v43 }
 0xae7   :  { %v1350_v49 = vpop.eup %1349 }
 0xae8   :  { %v777_v52 = vmul.f32 %v1350_v49, %v759_v46 }
 0xaea   :  { %v778_v54 = vpack.c.bf16 %v777_v52, %v776_v51 }
 0xaec   :  { %780 = vrot.lane.b32.xlu0 %v778_v54, %s1412_s16  ;;  %v1276_v54 = vld [vmem:[#allocation3 + $0x8] sm:$0xff]  }
 0xaed   :  { %1179 = vmatpush3.bf16.msra.mxu1 %v1276_v54 }
 0xaee   :  { %1180 = vmatprep.subr.bf16.mxu1 %v1415_v8 }
 0xb5e   :  { %v781_v55 = vpop.permute.xlu0 %780 }
 0xb5f   :  { %1161 = vmatmul.mubr.msk.bf16.vlgmr.msra.gmra.mrb[16].mxu0 %vm361_vm2, %v781_v55  ;;  %v1277_v55 = vld [vmem:[#allocation3 + $0x10] sm:$0xff]  }
 0xb60   :  { %870 = vmatpush1.bf16.msra.mxu0 %v1518_v34  ;;  %901 = vmatprep.mubr.bf16.mxu0 %v1414_v1  ;;  %v248_v34 = vadd.f32 %v1642_v24, %v1502_v14  ;;  %v250_v1 = vadd.f32 %v1644_v25, %v1500_v13 }
 0xb61   :  { %871 = vmatprep.subr.bf16.mxu0 %v1526_v36  ;;  %1181 = vmatpush3.bf16.msra.mxu1 %v1277_v55 }
 0xb62   :  { %1182 = vmatprep.subr.bf16.mxu1 %v1415_v8 }
 0xb64   :  { %872 = vmatpush1.bf16.msra.mxu0 %v1535_v37 }
 0xb65   :  { %873 = vmatprep.subr.bf16.mxu0 %v1541_v38  ;;  %v252_v38 = vadd.f32 %v1646_v26, %v1502_v14 }
 0xb68   :  { %874 = vmatpush1.bf16.msra.mxu0 %v1553_v40 }
 0xb69   :  { %875 = vmatprep.subr.bf16.mxu0 %v1559_v41 }
 0xb6c   :  { %876 = vmatpush1.bf16.msra.mxu0 %v1569_v42 }
 0xc32   :  { %v819_v47 = vpop.f32.mrb[16].mxu0 }
 0xc33   :  { %v828_v36 = vadd.f32 %v819_v47, %v246_v39  ;;  %v821_v37 = vpop.f32.mrb[17].mxu0  ;;  %v1278_v39 = vld [vmem:[#allocation3 + $0x18] sm:$0xff]  }
 0xc34   :  { %v829_v40 = vadd.f32 %v821_v37, %v248_v34  ;;  %v823_v56 = vpop.f32.mrb[18].mxu0  ;;  %1183 = vmatpush3.bf16.msra.mxu1 %v1278_v39 }
 0xc35   :  { %1351 = vtanh.f32 %v828_v36  ;;  %v830_v41 = vadd.f32 %v823_v56, %v250_v1  ;;  %v825_v42 = vpop.f32.mrb[19].mxu0 }
 0xc36   :  { %v831_v2 = vadd.f32 %v825_v42, %v252_v38 }
 0xc37   :  { %1353 = vtanh.f32 %v830_v41 }
 0xc38   :  { %1355 = vtanh.f32 %v829_v40 }
 0xc39   :  { %1357 = vtanh.f32 %v831_v2 }
 0xc3f   :  { %v1352_v23 = vpop.eup %1351 }
 0xc40   :  { %v836_v24 = vmul.f32 0.5, %v1352_v23 }
 0xc41   :  { %v1354_v31 = vpop.eup %1353 }
 0xc42   :  { %v837_v57 = vmul.f32 0.5, %v1354_v31  ;;  %v838_v58 = vadd.f32 0.5, %v836_v24  ;;  %v1356_v25 = vpop.eup %1355 }
 0xc43   :  { %v1358_v62 = vpop.eup %1357  ;;  %v840_v63 = vmul.f32 0.5, %v1356_v25 }
 0xc44   :  { %v846_v45 = vmul.f32 %v1356_v25, %v838_v58  ;;  %v839_v48 = vadd.f32 0.5, %v837_v57  ;;  %v844_v44 = vmul.f32 %v838_v58, %v772_v16  ;;  %v841_v33 = vmul.f32 0.5, %v1358_v62  ;;  %v1163_v58 = vld [vmem:[%s1810_s5] ss:$0 sm:$0xff]  ;;  %s1417_s5 = smov 32  }
 0xc45   :  { %v842_v19 = vadd.f32 0.5, %v840_v63 }
 0xc46   :  { %850 = vrot.lane.b32.xlu1 %v846_v45, %s1412_s16  ;;  %v847_v26 = vmul.f32 %v1358_v62, %v839_v48  ;;  %v845_v3 = vmul.f32 %v839_v48, %v773_v35  ;;  %v843_v20 = vadd.f32 0.5, %v841_v33 }
 0xc48   :  { %852 = vrot.lane.b32.xlu0 %v847_v26, %s1412_s16 }
 0xcb8   :  { %v851_v59 = vpop.permute.xlu1 %850 }
 0xcb9   :  { %v856_v60 = vadd.f32 %v851_v59, %v844_v44 }
 0xcba   :  { %v853_v4 = vpop.permute.xlu0 %852 }
 0xcbb   :  { %1359 = vtanh.f32 %v856_v60  ;;  %v857_v61 = vadd.f32 %v853_v4, %v845_v3 }
 0xcbd   :  { %1361 = vtanh.f32 %v857_v61 }
 0xcc5   :  { %v1360_v0 = vpop.eup %1359 }
 0xcc6   :  { %v860_v7 = vmul.f32 %v1360_v0, %v842_v19 }
 0xcc7   :  { %v1362_v5 = vpop.eup %1361 }
 0xcc8   :  { %v861_v9 = vmul.f32 %v1362_v5, %v843_v20 }
 0xcca   :  { %v862_v21 = vpack.c.bf16 %v861_v9, %v860_v7 }
 0xccc   :  { %864 = vrot.lane.b32.xlu1 %v862_v21, %s1412_s16 }
 0xd3e   :  { %v865_v12 = vpop.permute.xlu1 %864 }
 0xd3f   :  { %1162 = vmatmul.mubr.msk.bf16.vlgmr.msra.gmra.mrb[20].mxu0 %vm361_vm2, %v865_v12 }
 0xe12   :  { %v903_v22 = vpop.f32.mrb[20].mxu0 }
 0xe13   :  { %v912_v50 = vadd.f32 %v903_v22, %v256_v15  ;;  %v905_v16 = vpop.f32.mrb[21].mxu0 }
 0xe14   :  { %v913_v6 = vadd.f32 %v905_v16, %v258_v18  ;;  %v907_v35 = vpop.f32.mrb[22].mxu0  ;;  %v1169_v16 = vld [vmem:[%s1811_s6] ss:$0 sm:$0xff] }
 0xe15   :  { %1363 = vtanh.f32 %v912_v50  ;;  %v914_v17 = vadd.f32 %v907_v35, %v260_v32  ;;  %v909_v53 = vpop.f32.mrb[23].mxu0 }
 0xe16   :  { %v915_v11 = vadd.f32 %v909_v53, %v262_v10 }
 0xe17   :  { %1365 = vtanh.f32 %v914_v17 }
 0xe18   :  { %1367 = vtanh.f32 %v913_v6 }
 0xe19   :  { %1369 = vtanh.f32 %v915_v11 }
 0xe1f   :  { %v1364_v27 = vpop.eup %1363 }
 0xe20   :  { %v920_v28 = vmul.f32 0.5, %v1364_v27 }
 0xe21   :  { %v1366_v43 = vpop.eup %1365 }
 0xe22   :  { %v921_v46 = vmul.f32 0.5, %v1366_v43  ;;  %v922_v49 = vadd.f32 0.5, %v920_v28  ;;  %v1368_v13 = vpop.eup %1367 }
 0xe23   :  { %v1370_v52 = vpop.eup %1369  ;;  %v924_v40 = vmul.f32 0.5, %v1368_v13 }
 0xe24   :  { %v930_v29 = vmul.f32 %v1368_v13, %v922_v49  ;;  %v923_v51 = vadd.f32 0.5, %v921_v46  ;;  %v928_v34 = vmul.f32 %v922_v49, %v856_v60  ;;  %v925_v56 = vmul.f32 0.5, %v1370_v52  ;;  %v1170_v13 = vld [vmem:[#allocation2] ss:$0 sm:$0xff] }
 0xe25   :  { %v926_v42 = vadd.f32 0.5, %v924_v40 }
 0xe26   :  { %934 = vrot.lane.b32.xlu0 %v930_v29, %s1412_s16  ;;  %v931_v14 = vmul.f32 %v1370_v52, %v923_v51  ;;  %v929_v36 = vmul.f32 %v923_v51, %v857_v61  ;;  %v927_v2 = vadd.f32 0.5, %v925_v56 }
 0xe28   :  { %936 = vrot.lane.b32.xlu1 %v931_v14, %s1412_s16 }
 0xe98   :  { %v935_v47 = vpop.permute.xlu0 %934 }
 0xe99   :  { %v940_v1 = vadd.f32 %v935_v47, %v928_v34 }
 0xe9a   :  { %v937_v37 = vpop.permute.xlu1 %936 }
 0xe9b   :  { %1371 = vtanh.f32 %v940_v1  ;;  %v941_v38 = vadd.f32 %v937_v37, %v929_v36 }
 0xe9d   :  { %1373 = vtanh.f32 %v941_v38 }
 0xea5   :  { %v1372_v41 = vpop.eup %1371 }
 0xea6   :  { %v944_v24 = vmul.f32 %v1372_v41, %v926_v42 }
 0xea7   :  { %v1374_v23 = vpop.eup %1373 }
 0xea8   :  { %v945_v31 = vmul.f32 %v1374_v23, %v927_v2 }
 0xeaa   :  { %v946_v57 = vpack.c.bf16 %v945_v31, %v944_v24 }
 0xeac   :  { %962 = vrot.lane.b32.xlu0 %v946_v57, %s1412_s16 }
 0xf1e   :  { %v963_v8 = vpop.permute.xlu0 %962 }
 0xf1f   :  { %1185 = vmatmul.mubr.msk.bf16.vlgmr.msra.gmra.mrb[32].mxu1 %vm361_vm2, %v963_v8 }
 0xff2   :  { %v1025_v25 = vpop.f32.mrb[32].mxu1 }
 0xff3   :  { %v1026_v45 = vadd.f32 %v1163_v58, %v1025_v25  ;;  %v1186_v48 = vpop.f32.mrb[33].mxu1 }
 0xff4   :  { %v1028_v62 = vpop.f32.mrb[34].mxu1 }
 0xff5   :  { %1375 = vtanh.f32 %v1026_v45  ;;  %v1029_v26 = vadd.f32 %v1163_v58, %v1028_v62  ;;  %v1187_v44 = vpop.f32.mrb[35].mxu1 }
 0xff7   :  { %1377 = vtanh.f32 %v1029_v26 }
 0xfff   :  { %v1376_v59 = vpop.eup %1375 }
0x1000   :  { %1050 = vrot.lane.b32.xlu1 %v1376_v59, %s1412_s16  ;;  %v1034_v3 = vmul.f32 0.5, %v1376_v59 }
0x1001   :  { %v1378_v60 = vpop.eup %1377 }
0x1002   :  { %1052 = vrot.lane.b32.xlu0 %v1378_v60, %s1412_s16  ;;  %v1035_v4 = vmul.f32 0.5, %v1378_v60  ;;  %v1036_v61 = vadd.f32 0.5, %v1034_v3 }
0x1004   :  { %1040 = vrot.lane.b32.xlu1 %v940_v1, %s1412_s16  ;;  %v1037_v0 = vadd.f32 0.5, %v1035_v4 }
0x1006   :  { %1042 = vrot.lane.b32.xlu0 %v941_v38, %s1412_s16 }
0x1072   :  { %v1051_v63 = vpop.permute.xlu1 %1050 }
0x1073   :  { %v1056_v33 = vmul.f32 %v1051_v63, %v1036_v61 }
0x1074   :  { %v1053_v19 = vpop.permute.xlu0 %1052 }
0x1075   :  { %v1057_v20 = vmul.f32 %v1053_v19, %v1037_v0  ;;  %1060 = vrot.lane.b32.xlu1 %v1056_v33, %s1417_s5 }
0x1076   :  { %v1041_v5 = vpop.permute.xlu1 %1040 }
0x1077   :  { %1062 = vrot.lane.b32.xlu0 %v1057_v20, %s1417_s5  ;;  %v1046_v9 = vmul.f32 %v1041_v5, %v1036_v61 }
0x1078   :  { %v1043_v7 = vpop.permute.xlu0 %1042 }
0x1079   :  { %v1047_v12 = vmul.f32 %v1043_v7, %v1037_v0 }
0x10e7   :  { %v1061_v21 = vpop.permute.xlu1 %1060 }
0x10e8   :  { %v1066_v15 = vadd.f32 %v1061_v21, %v1046_v9 }
0x10e9   :  { %v1063_v18 = vpop.permute.xlu0 %1062 }
0x10ea   :  { %1379 = vtanh.f32 %v1066_v15  ;;  %v1067_v22 = vadd.f32 %v1063_v18, %v1047_v12 }
0x10ec   :  { %1381 = vtanh.f32 %v1067_v22 }
0x10f4   :  { %v1380_v32 = vpop.eup %1379 }
0x10f5   :  { %1072 = vrot.lane.b32.xlu1 %v1380_v32, %s1412_s16 }
0x10f6   :  { %v1382_v50 = vpop.eup %1381 }
0x10f7   :  { %1074 = vrot.lane.b32.xlu0 %v1382_v50, %s1412_s16 }
0x10f9   :  { %1086 = vrot.lane.b32.xlu1 %v1169_v16, %s1418_s10 }
0x1167   :  { %v1073_v10 = vpop.permute.xlu1 %1072 }
0x1168   :  { %v1078_v35 = vmul.f32 %v1073_v10, %v1036_v61 }
0x1169   :  { %v1075_v6 = vpop.permute.xlu0 %1074 }
0x116a   :  { %v1079_v17 = vmul.f32 %v1075_v6, %v1037_v0 }
0x116b   :  { %v1087_v53 = vpop.permute.xlu1 %1086 }
0x116c   :  { %v1089_v11 = vmul.f32 %v1087_v53, %v1078_v35  ;;  %v1090_v27 = vmul.f32 %v1087_v53, %v1079_v17 }
0x116e   :  { %1093 = vrot.lane.b32.xlu0 %v1089_v11, %s1417_s5  ;;  %1095 = vrot.lane.b32.xlu1 %v1090_v27, %s1417_s5 }
0x11e0   :  { %v1096_v28 = vpop.permute.xlu1 %1095  ;;  %v1094_v43 = vpop.permute.xlu0 %1093 }
0x11e1   :  { %v1102_v46 = vsel %vm273_vm1, %v1096_v28, 0.0  ;;  %v1099_v49 = vsel %vm273_vm1, %v1094_v43, 0.0 }
0x11e2   :  { %1103 = vadd.xlane.f32.xlu1 %v1102_v46  ;;  %1100 = vadd.xlane.f32.xlu0 %v1099_v49 }
0x126f   :  { %v1104_v29 = vpop.xlane.xlu1 %1103  ;;  %v1101_v51 = vpop.xlane.xlu0 %1100 }
0x1270   :  { %v1113_v52 = vadd.f32 %v1170_v13, %v1104_v29  ;;  %v1112_v14 = vadd.f32 %v1170_v13, %v1101_v51 }
0x1272   :  { %v1115_v30 = vmul.f32 0.5, %v1113_v52  ;;  %v1114_v54 = vmul.f32 0.5, %v1112_v14 }
0x1274   :  { %1383 = vtanh.f32 %v1115_v30 }
0x1275   :  { %1385 = vtanh.f32 %v1114_v54 }
0x127e   :  { %v1384_v55 = vpop.eup %1383 }
0x127f   :  { %v1386_v39 = vpop.eup %1385  ;;  %v1119_v34 = vadd.f32 1.0, %v1384_v55 }
0x1280   :  { %v1118_v47 = vadd.f32 1.0, %v1386_v39 }
0x1281   :  { %v1121_v1 = vmul.f32 0.5, %v1119_v34 }
0x1282   :  { %v1120_v36 = vmul.f32 0.5, %v1118_v47 }
0x1283   :  { %1124 = vst.msk [vmem:[%s1813_s8 + $0x8] sm:$0xff] %vm1122_vm4, %v1121_v1 }
0x1284   :  { %1123 = vst.msk [vmem:[%s1813_s8] sm:$0xff] %vm1122_vm4, %v1120_v36 }
0x1285   :  { %1129 = vsyncpa [#allocation4], 1 }

</bundles_post_ra>
